<compile_context>
chip_gen: v7x
topology: tpu7x:2x2x1
jax: 0.10.0
libtpu: 0.0.40
codegen_flags: <defaults>
</compile_context>

<pallas_src>
import functools

import jax
import jax.numpy as jnp
from jax import lax
from jax.experimental import pallas as pl
from jax.experimental.pallas import tpu as pltpu

LANES = 128       # tile width  (lane dim, last block dim -> unmasked stores)
TILE_ROWS = 16    # tile height (sublane rows; 16 keeps vreg pressure low on v5e)


def _rasterize_kernel(faces_ref, counts_ref, ids_ref, tex_ref,   # scalar prefetch (SMEM)
                      rgb_ref, alpha_ref, depth_ref,             # VMEM outputs
                      fidx_ref,                                   # VMEM scratch
                      *, texture_size, tile_rows, image_size,
                      near, far, eps, background_color, n_xtiles, n_tiles):
    f32 = jnp.float32
    T = texture_size
    TR = tile_rows
    IS = image_size
    TT3C = T * T * T * 3

    b = pl.program_id(0)
    ty = pl.program_id(1)
    tx = pl.program_id(2)
    t = ty * n_xtiles + tx
    row = b * n_tiles + t                      # row into the per-tile face-id list
    cnt = counts_ref[b, t]                     # number of binned faces for this tile

    # pixel-center NDC coordinates for this tile, generated in-kernel (no DMA)
    ys = (ty * TR + lax.broadcasted_iota(jnp.int32, (TR, LANES), 0)).astype(f32)
    xs = (tx * LANES + lax.broadcasted_iota(jnp.int32, (TR, LANES), 1)).astype(f32)
    inv_is = 1.0 / float(IS)
    yp = (2.0 * ys + 1.0 - IS) * inv_is
    xp = (2.0 * xs + 1.0 - IS) * inv_is

    # init: z-buffer = far, face index = -1
    depth_ref[0] = jnp.full((TR, LANES), far, f32)
    fidx_ref[...] = jnp.full((TR, LANES), -1, jnp.int32)

    def read_face(fn):
        base = fn * 9
        return [faces_ref[b, base + k] for k in range(9)]

    def edge_functions(x0, y0, x1, y1, x2, y2):
        # unnormalized barycentric (edge) functions; e0+e1+e2 == denom > 0
        e0 = (y1 - y2) * xp + (x2 - x1) * yp + (x1 * y2 - x2 * y1)
        e1 = (y2 - y0) * xp + (x0 - x2) * yp + (x2 * y0 - x0 * y2)
        e2 = (y0 - y1) * xp + (x1 - x0) * yp + (x0 * y1 - x1 * y0)
        return e0, e1, e2

    # ---------------- pass 1: z-buffer / winning face index ------------------------
    def zpass_body(i, carry):
        fn = ids_ref[row, i]
        x0, y0, z0, x1, y1, z1, x2, y2, z2 = read_face(fn)
        denom = x2 * (y0 - y1) + x0 * (y1 - y2) + x1 * (y2 - y0)   # > 0 (binned)
        inv_den = 1.0 / denom
        iz0 = 1.0 / z0
        iz1 = 1.0 / z1
        iz2 = 1.0 / z2

        e0, e1, e2 = edge_functions(x0, y0, x1, y1, x2, y2)
        inside = (e0 >= 0.0) & (e1 >= 0.0) & (e2 >= 0.0)           # signs of edge fns
        w0 = jnp.clip(e0 * inv_den, 0.0, 1.0)
        w1 = jnp.clip(e1 * inv_den, 0.0, 1.0)
        w2 = jnp.clip(e2 * inv_den, 0.0, 1.0)
        inv_ws = 1.0 / (w0 + w1 + w2)
        w0 = w0 * inv_ws
        w1 = w1 * inv_ws
        w2 = w2 * inv_ws
        zp = 1.0 / (w0 * iz0 + w1 * iz1 + w2 * iz2)                # exact divide

        dcur = depth_ref[0]
        valid = inside & (zp > near) & (zp < far) & (zp < dcur)
        depth_ref[0] = jnp.where(valid, zp, dcur)
        fidx_ref[...] = jnp.where(valid, fn, fidx_ref[...])
        return carry

    lax.fori_loop(0, cnt, zpass_body, 0)

    fidx = fidx_ref[...]
    alpha_ref[0] = (fidx >= 0).astype(f32)

    # background first; winning faces overwrite their pixels in pass 2
    for ch in range(3):
        rgb_ref[0, ch] = jnp.full((TR, LANES), background_color[ch], f32)

    # ---------------- pass 2: deferred trilinear texture sampling ------------------
    def texpass_body(i, carry):
        fn = ids_ref[row, i]
        sel = fidx_ref[...] == fn
        won = jnp.any(sel)                       # cross-lane reduce -> scalar early-out

        @pl.when(won)
        def _():
            x0, y0, z0, x1, y1, z1, x2, y2, z2 = read_face(fn)
            denom = x2 * (y0 - y1) + x0 * (y1 - y2) + x1 * (y2 - y0)
            inv_den = 1.0 / denom
            izs = (1.0 / z0, 1.0 / z1, 1.0 / z2)

            # recompute barycentric weights for the winning face (no pass-1 scratch)
            e0, e1, e2 = edge_functions(x0, y0, x1, y1, x2, y2)
            w = [jnp.clip(e0 * inv_den, 0.0, 1.0),
                 jnp.clip(e1 * inv_den, 0.0, 1.0),
                 jnp.clip(e2 * inv_den, 0.0, 1.0)]
            inv_ws = 1.0 / (w[0] + w[1] + w[2])
            zp = depth_ref[0]

            # per-axis, per-position trilinear weights
            axis_w = []
            for k in range(3):
                tco = (w[k] * inv_ws) * zp * ((T - 1) * izs[k])
                tco = jnp.minimum(jnp.maximum(tco, 0.0), T - 1 - eps)
                fl = jnp.floor(tco)
                fr = tco - fl
                per_pos = []
                for a in range(T):
                    wa = jnp.where(fl == a, 1.0 - fr, 0.0)
                    if a > 0:
                        wa = wa + jnp.where(fl == a - 1, fr, 0.0)
                    per_pos.append(wa)
                axis_w.append(per_pos)

            wx, wy, wz = axis_w[0], axis_w[1], axis_w[2]
            tbase = fn * TT3C
            for ch in range(3):
                a_sum = None
                for a in range(T):
                    b_sum = None
                    for bb in range(T):
                        c_sum = None
                        for c in range(T):
                            vox = ((a * T + bb) * T + c) * 3
                            texel = tex_ref[b, tbase + vox + ch]   # SMEM scalar
                            term = wz[c] * texel                   # scalar * vector
                            c_sum = term if c_sum is None else c_sum + term
                        term_b = wy[bb] * c_sum
                        b_sum = term_b if b_sum is None else b_sum + term_b
                    term_a = wx[a] * b_sum
                    a_sum = term_a if a_sum is None else a_sum + term_a
                rgb_ref[0, ch] = jnp.where(sel, a_sum, rgb_ref[0, ch])

        return carry

    lax.fori_loop(0, cnt, texpass_body, 0)


class Rasterize:
    """JAX/Pallas equivalent of neural_renderer.Rasterize (forward only)."""

    def __init__(self, image_size, near, far, eps, background_color,
                 return_rgb=False, return_alpha=False, return_depth=False):
        self.image_size = int(image_size)
        self.near = float(near)
        self.far = float(far)
        self.eps = float(eps)
        self.background_color = tuple(float(c) for c in background_color)
        self.return_rgb = return_rgb
        self.return_alpha = return_alpha
        self.return_depth = return_depth

    def __call__(self, faces, textures):
        faces = jnp.asarray(faces, jnp.float32)
        textures = jnp.asarray(textures, jnp.float32)
        B, F = faces.shape[:2]
        T = int(textures.shape[2])
        IS = self.image_size
        TT3C = T * T * T * 3

        TR = TILE_ROWS
        rows_pad = -(-IS // TR) * TR
        cols_pad = -(-IS // LANES) * LANES
        NY = rows_pad // TR
        NX = cols_pad // LANES
        NT = NY * NX

        faces_flat = faces.reshape(B, F * 9)
        tex_flat = textures.reshape(B, F * TT3C)

        # ---------------- host-side per-tile face binning (conservative) ----------
        fx = faces[..., 0]                                           # [B, F, 3]
        fy = faces[..., 1]
        x0, y0 = faces[:, :, 0, 0], faces[:, :, 0, 1]
        x1, y1 = faces[:, :, 1, 0], faces[:, :, 1, 1]
        x2, y2 = faces[:, :, 2, 0], faces[:, :, 2, 1]
        denom = x2 * (y0 - y1) + x0 * (y1 - y2) + x1 * (y2 - y0)     # [B, F]
        keep = denom > 0.0                        # front-facing, non-degenerate
        fx_min, fx_max = fx.min(-1), fx.max(-1)
        fy_min, fy_max = fy.min(-1), fy.max(-1)

        isf = float(IS)
        ty_i = jnp.arange(NY, dtype=jnp.float32)
        tyl = (2.0 * (ty_i * TR) + 1.0 - isf) / isf                  # tile y bounds
        tyh = (2.0 * (ty_i * TR + (TR - 1)) + 1.0 - isf) / isf       # (pixel centers)
        tx_i = jnp.arange(NX, dtype=jnp.float32)
        txl = (2.0 * (tx_i * LANES) + 1.0 - isf) / isf               # tile x bounds
        txh = (2.0 * (tx_i * LANES + (LANES - 1)) + 1.0 - isf) / isf

        ovl_y = ((fy_max[:, None, :] >= tyl[None, :, None]) &
                 (fy_min[:, None, :] <= tyh[None, :, None]))         # [B, NY, F]
        ovl_x = ((fx_max[:, None, :] >= txl[None, :, None]) &
                 (fx_min[:, None, :] <= txh[None, :, None]))         # [B, NX, F]
        ovl = (keep[:, None, None, :]
               & ovl_y[:, :, None, :]
               & ovl_x[:, None, :, :])                               # [B, NY, NX, F]
        counts = ovl.sum(-1).astype(jnp.int32).reshape(B, NT)
        # stable argsort puts overlapping face ids first, preserving face order
        face_ids = (jnp.argsort(jnp.logical_not(ovl), axis=-1, stable=True)
                    .astype(jnp.int32).reshape(B * NT, F))

        kernel = functools.partial(
            _rasterize_kernel,
            texture_size=T, tile_rows=TR, image_size=IS,
            near=self.near, far=self.far, eps=self.eps,
            background_color=self.background_color,
            n_xtiles=NX, n_tiles=NT)

        grid_spec = pltpu.PrefetchScalarGridSpec(
            num_scalar_prefetch=4,          # faces, counts, face_ids, textures -> SMEM
            grid=(B, NY, NX),
            in_specs=[],
            out_specs=(
                pl.BlockSpec((1, 3, TR, LANES), lambda b, ty, tx, *_: (b, 0, ty, tx)),
                pl.BlockSpec((1, TR, LANES), lambda b, ty, tx, *_: (b, ty, tx)),
                pl.BlockSpec((1, TR, LANES), lambda b, ty, tx, *_: (b, ty, tx)),
            ),
            scratch_shapes=[
                pltpu.VMEM((TR, LANES), jnp.int32),    # winning face index
            ],
        )

        rgb_p, alpha_p, depth_p = pl.pallas_call(
            kernel,
            out_shape=(
                jax.ShapeDtypeStruct((B, 3, rows_pad, cols_pad), jnp.float32),
                jax.ShapeDtypeStruct((B, rows_pad, cols_pad), jnp.float32),
                jax.ShapeDtypeStruct((B, rows_pad, cols_pad), jnp.float32),
            ),
            grid_spec=grid_spec,
            compiler_params=pltpu.CompilerParams(
                dimension_semantics=("parallel", "parallel", "parallel")),
        )(faces_flat, counts, face_ids, tex_flat)

        # back to PyTorch layouts
        rgb = jnp.transpose(rgb_p[:, :, :IS, :IS], (0, 2, 3, 1))     # [B, IS, IS, 3]
        alpha = alpha_p[:, :IS, :IS]                                 # [B, IS, IS]
        depth = depth_p[:, :IS, :IS]                                 # [B, IS, IS]

        empty = jnp.zeros((0,), jnp.float32)
        rgb_r = rgb if self.return_rgb else empty
        alpha_r = alpha if self.return_alpha else empty
        depth_r = depth if self.return_depth else empty
        return rgb_r, alpha_r, depth_r


if __name__ == "__main__":
    key = jax.random.PRNGKey(0)
    B, F, T, IS = 2, 8, 2, 16

    k1, k2, k3 = jax.random.split(key, 3)
    xy = jax.random.uniform(k1, (B, F, 3, 2), minval=-1.0, maxval=1.0)
    z = jax.random.uniform(k2, (B, F, 3, 1), minval=1.0, maxval=10.0)
    faces = jnp.concatenate([xy, z], axis=-1).astype(jnp.float32)      # [B, F, 3, 3]
    textures = jax.random.uniform(k3, (B, F, T, T, T, 3), dtype=jnp.float32)

    rasterize = Rasterize(image_size=IS, near=0.1, far=100.0, eps=1e-3,
                          background_color=(0.1, 0.2, 0.3),
                          return_rgb=True, return_alpha=True, return_depth=True)

    rgb, alpha, depth = rasterize(faces, textures)
    jax.block_until_ready((rgb, alpha, depth))

    assert rgb.shape == (B, IS, IS, 3) and rgb.dtype == jnp.float32
    assert alpha.shape == (B, IS, IS) and alpha.dtype == jnp.float32
    assert depth.shape == (B, IS, IS) and depth.dtype == jnp.float32
    assert bool(jnp.all(jnp.isfinite(depth)))
    assert bool(jnp.all(jnp.isfinite(rgb)))
    print("KERNEL_OK")
</pallas_src>

<mosaic_0001>
module attributes {stable_mosaic.version = 11 : i64} {
  func.func @_rasterize_kernel(%arg0: i32, %arg1: i32, %arg2: i32, %arg3: memref<2x72xf32, #tpu.memory_space<smem>>, %arg4: memref<2x1xi32, #tpu.memory_space<smem>>, %arg5: memref<2x8xi32, #tpu.memory_space<smem>>, %arg6: memref<2x192xf32, #tpu.memory_space<smem>>, %arg7: memref<1x3x16x128xf32, #tpu.memory_space<vmem>>, %arg8: memref<1x16x128xf32, #tpu.memory_space<vmem>>, %arg9: memref<1x16x128xf32, #tpu.memory_space<vmem>>, %arg10: memref<16x128xi32, #tpu.memory_space<vmem>>) attributes {dimension_semantics = [#tpu.dimension_semantics<parallel>, #tpu.dimension_semantics<parallel>, #tpu.dimension_semantics<parallel>], iteration_bounds = array<i64: 2, 1, 1>, scalar_prefetch = 4 : i64, scratch_operands = 1 : i64, tpu.core_type = #tpu.core_type<tc>, window_params = [{transform_indices = @transform_0, window_bounds = array<i64: 1, 3, 16, 128>}, {transform_indices = @transform_1, window_bounds = array<i64: 1, 16, 128>}, {transform_indices = @transform_2, window_bounds = array<i64: 1, 16, 128>}]} {
    %c1_i32 = arith.constant 1 : i32
    %0 = arith.muli %arg1, %c1_i32 : i32
    %1 = arith.addi %0, %arg2 : i32
    %c1_i32_0 = arith.constant 1 : i32
    %2 = arith.muli %arg0, %c1_i32_0 : i32
    %3 = arith.addi %2, %1 : i32
    %4 = arith.index_cast %arg0 : i32 to index
    %5 = arith.index_cast %1 : i32 to index
    %6 = memref.load %arg4[%4, %5] : memref<2x1xi32, #tpu.memory_space<smem>>
    %c16_i32 = arith.constant 16 : i32
    %7 = arith.muli %arg1, %c16_i32 : i32
    %8 = tpu.iota {dimensions = array<i32: 0>} : vector<16x128xi32>
    %9 = vector.broadcast %7 : i32 to vector<16x128xi32>
    %10 = arith.addi %9, %8 : vector<16x128xi32>
    %11 = arith.sitofp %10 : vector<16x128xi32> to vector<16x128xf32>
    %c128_i32 = arith.constant 128 : i32
    %12 = arith.muli %arg2, %c128_i32 : i32
    %13 = tpu.iota {dimensions = array<i32: 1>} : vector<16x128xi32>
    %14 = vector.broadcast %12 : i32 to vector<16x128xi32>
    %15 = arith.addi %14, %13 : vector<16x128xi32>
    %16 = arith.sitofp %15 : vector<16x128xi32> to vector<16x128xf32>
    %cst = arith.constant 2.000000e+00 : f32
    %17 = vector.broadcast %cst : f32 to vector<16x128xf32>
    %18 = arith.mulf %17, %11 : vector<16x128xf32>
    %cst_1 = arith.constant 1.000000e+00 : f32
    %19 = vector.broadcast %cst_1 : f32 to vector<16x128xf32>
    %20 = arith.addf %18, %19 : vector<16x128xf32>
    %cst_2 = arith.constant 1.600000e+01 : f32
    %21 = vector.broadcast %cst_2 : f32 to vector<16x128xf32>
    %22 = arith.subf %20, %21 : vector<16x128xf32>
    %cst_3 = arith.constant 6.250000e-02 : f32
    %23 = vector.broadcast %cst_3 : f32 to vector<16x128xf32>
    %24 = arith.mulf %22, %23 : vector<16x128xf32>
    %cst_4 = arith.constant 2.000000e+00 : f32
    %25 = vector.broadcast %cst_4 : f32 to vector<16x128xf32>
    %26 = arith.mulf %25, %16 : vector<16x128xf32>
    %cst_5 = arith.constant 1.000000e+00 : f32
    %27 = vector.broadcast %cst_5 : f32 to vector<16x128xf32>
    %28 = arith.addf %26, %27 : vector<16x128xf32>
    %cst_6 = arith.constant 1.600000e+01 : f32
    %29 = vector.broadcast %cst_6 : f32 to vector<16x128xf32>
    %30 = arith.subf %28, %29 : vector<16x128xf32>
    %cst_7 = arith.constant 6.250000e-02 : f32
    %31 = vector.broadcast %cst_7 : f32 to vector<16x128xf32>
    %32 = arith.mulf %30, %31 : vector<16x128xf32>
    %cst_8 = arith.constant 1.000000e+02 : f32
    %33 = vector.broadcast %cst_8 : f32 to vector<16x128xf32>
    %c0 = arith.constant 0 : index
    %c0_9 = arith.constant 0 : index
    %c0_10 = arith.constant 0 : index
    %34 = vector.load %arg9[%c0, %c0_9, %c0_10] : memref<1x16x128xf32, #tpu.memory_space<vmem>>, vector<1x16x128xf32>
    %35 = vector.shape_cast %34 : vector<1x16x128xf32> to vector<16x128xf32>
    %36 = vector.shape_cast %33 : vector<16x128xf32> to vector<1x16x128xf32>
    tpu.vector_store %arg9[%c0, %c0_9, %c0_10], %36 {strides = array<i32>} : memref<1x16x128xf32, #tpu.memory_space<vmem>>, vector<1x16x128xf32>,
    %c-1_i32 = arith.constant -1 : i32
    %37 = vector.broadcast %c-1_i32 : i32 to vector<16x128xi32>
    %c0_11 = arith.constant 0 : index
    %c0_12 = arith.constant 0 : index
    %38 = vector.load %arg10[%c0_11, %c0_12] : memref<16x128xi32, #tpu.memory_space<vmem>>, vector<16x128xi32>
    tpu.vector_store %arg10[%c0_11, %c0_12], %37 {strides = array<i32>} : memref<16x128xi32, #tpu.memory_space<vmem>>, vector<16x128xi32>,
    %c0_i32 = arith.constant 0 : i32
    %c0_i32_13 = arith.constant 0 : i32
    %39 = arith.subi %6, %c0_i32_13 : i32
    %40 = arith.addi %c0_i32_13, %39 : i32
    %c1_i32_14 = arith.constant 1 : i32
    scf.for %arg11 = %c0_i32_13 to %40 step %c1_i32_14  : i32 {
      %63 = arith.index_cast %3 : i32 to index
      %64 = arith.index_cast %arg11 : i32 to index
      %65 = memref.load %arg5[%63, %64] : memref<2x8xi32, #tpu.memory_space<smem>>
      %c9_i32 = arith.constant 9 : i32
      %66 = arith.muli %65, %c9_i32 : i32
      %c0_i32_37 = arith.constant 0 : i32
      %67 = arith.addi %66, %c0_i32_37 : i32
      %68 = arith.index_cast %arg0 : i32 to index
      %69 = arith.index_cast %67 : i32 to index
      %70 = memref.load %arg3[%68, %69] : memref<2x72xf32, #tpu.memory_space<smem>>
      %c1_i32_38 = arith.constant 1 : i32
      %71 = arith.addi %66, %c1_i32_38 : i32
      %72 = arith.index_cast %arg0 : i32 to index
      %73 = arith.index_cast %71 : i32 to index
      %74 = memref.load %arg3[%72, %73] : memref<2x72xf32, #tpu.memory_space<smem>>
      %c2_i32 = arith.constant 2 : i32
      %75 = arith.addi %66, %c2_i32 : i32
      %76 = arith.index_cast %arg0 : i32 to index
      %77 = arith.index_cast %75 : i32 to index
      %78 = memref.load %arg3[%76, %77] : memref<2x72xf32, #tpu.memory_space<smem>>
      %c3_i32 = arith.constant 3 : i32
      %79 = arith.addi %66, %c3_i32 : i32
      %80 = arith.index_cast %arg0 : i32 to index
      %81 = arith.index_cast %79 : i32 to index
      %82 = memref.load %arg3[%80, %81] : memref<2x72xf32, #tpu.memory_space<smem>>
      %c4_i32 = arith.constant 4 : i32
      %83 = arith.addi %66, %c4_i32 : i32
      %84 = arith.index_cast %arg0 : i32 to index
      %85 = arith.index_cast %83 : i32 to index
      %86 = memref.load %arg3[%84, %85] : memref<2x72xf32, #tpu.memory_space<smem>>
      %c5_i32 = arith.constant 5 : i32
      %87 = arith.addi %66, %c5_i32 : i32
      %88 = arith.index_cast %arg0 : i32 to index
      %89 = arith.index_cast %87 : i32 to index
      %90 = memref.load %arg3[%88, %89] : memref<2x72xf32, #tpu.memory_space<smem>>
      %c6_i32 = arith.constant 6 : i32
      %91 = arith.addi %66, %c6_i32 : i32
      %92 = arith.index_cast %arg0 : i32 to index
      %93 = arith.index_cast %91 : i32 to index
      %94 = memref.load %arg3[%92, %93] : memref<2x72xf32, #tpu.memory_space<smem>>
      %c7_i32 = arith.constant 7 : i32
      %95 = arith.addi %66, %c7_i32 : i32
      %96 = arith.index_cast %arg0 : i32 to index
      %97 = arith.index_cast %95 : i32 to index
      %98 = memref.load %arg3[%96, %97] : memref<2x72xf32, #tpu.memory_space<smem>>
      %c8_i32 = arith.constant 8 : i32
      %99 = arith.addi %66, %c8_i32 : i32
      %100 = arith.index_cast %arg0 : i32 to index
      %101 = arith.index_cast %99 : i32 to index
      %102 = memref.load %arg3[%100, %101] : memref<2x72xf32, #tpu.memory_space<smem>>
      %103 = arith.subf %74, %86 : f32
      %104 = arith.mulf %94, %103 : f32
      %105 = arith.subf %86, %98 : f32
      %106 = arith.mulf %70, %105 : f32
      %107 = arith.addf %104, %106 : f32
      %108 = arith.subf %98, %74 : f32
      %109 = arith.mulf %82, %108 : f32
      %110 = arith.addf %107, %109 : f32
      %cst_39 = arith.constant 1.000000e+00 : f32
      %111 = arith.divf %cst_39, %110 : f32
      %cst_40 = arith.constant 1.000000e+00 : f32
      %112 = arith.divf %cst_40, %78 : f32
      %cst_41 = arith.constant 1.000000e+00 : f32
      %113 = arith.divf %cst_41, %90 : f32
      %cst_42 = arith.constant 1.000000e+00 : f32
      %114 = arith.divf %cst_42, %102 : f32
      %115 = arith.subf %86, %98 : f32
      %116 = vector.broadcast %115 : f32 to vector<16x128xf32>
      %117 = arith.mulf %116, %32 : vector<16x128xf32>
      %118 = arith.subf %94, %82 : f32
      %119 = vector.broadcast %118 : f32 to vector<16x128xf32>
      %120 = arith.mulf %119, %24 : vector<16x128xf32>
      %121 = arith.addf %117, %120 : vector<16x128xf32>
      %122 = arith.mulf %82, %98 : f32
      %123 = arith.mulf %94, %86 : f32
      %124 = arith.subf %122, %123 : f32
      %125 = vector.broadcast %124 : f32 to vector<16x128xf32>
      %126 = arith.addf %121, %125 : vector<16x128xf32>
      %127 = arith.subf %98, %74 : f32
      %128 = vector.broadcast %127 : f32 to vector<16x128xf32>
      %129 = arith.mulf %128, %32 : vector<16x128xf32>
      %130 = arith.subf %70, %94 : f32
      %131 = vector.broadcast %130 : f32 to vector<16x128xf32>
      %132 = arith.mulf %131, %24 : vector<16x128xf32>
      %133 = arith.addf %129, %132 : vector<16x128xf32>
      %134 = arith.mulf %94, %74 : f32
      %135 = arith.mulf %70, %98 : f32
      %136 = arith.subf %134, %135 : f32
      %137 = vector.broadcast %136 : f32 to vector<16x128xf32>
      %138 = arith.addf %133, %137 : vector<16x128xf32>
      %139 = arith.subf %74, %86 : f32
      %140 = vector.broadcast %139 : f32 to vector<16x128xf32>
      %141 = arith.mulf %140, %32 : vector<16x128xf32>
      %142 = arith.subf %82, %70 : f32
      %143 = vector.broadcast %142 : f32 to vector<16x128xf32>
      %144 = arith.mulf %143, %24 : vector<16x128xf32>
      %145 = arith.addf %141, %144 : vector<16x128xf32>
      %146 = arith.mulf %70, %86 : f32
      %147 = arith.mulf %82, %74 : f32
      %148 = arith.subf %146, %147 : f32
      %149 = vector.broadcast %148 : f32 to vector<16x128xf32>
      %150 = arith.addf %145, %149 : vector<16x128xf32>
      %cst_43 = arith.constant 0.000000e+00 : f32
      %151 = vector.broadcast %cst_43 : f32 to vector<16x128xf32>
      %152 = arith.cmpf oge, %126, %151 : vector<16x128xf32>
      %cst_44 = arith.constant 0.000000e+00 : f32
      %153 = vector.broadcast %cst_44 : f32 to vector<16x128xf32>
      %154 = arith.cmpf oge, %138, %153 : vector<16x128xf32>
      %155 = arith.andi %152, %154 : vector<16x128xi1>
      %cst_45 = arith.constant 0.000000e+00 : f32
      %156 = vector.broadcast %cst_45 : f32 to vector<16x128xf32>
      %157 = arith.cmpf oge, %150, %156 : vector<16x128xf32>
      %158 = arith.andi %155, %157 : vector<16x128xi1>
      %159 = vector.broadcast %111 : f32 to vector<16x128xf32>
      %160 = arith.mulf %126, %159 : vector<16x128xf32>
      %cst_46 = arith.constant 0.000000e+00 : f32
      %cst_47 = arith.constant 1.000000e+00 : f32
      %161 = vector.broadcast %cst_46 : f32 to vector<16x128xf32>
      %162 = arith.maximumf %161, %160 : vector<16x128xf32>
      %163 = vector.broadcast %cst_47 : f32 to vector<16x128xf32>
      %164 = arith.minimumf %163, %162 : vector<16x128xf32>
      %165 = vector.broadcast %111 : f32 to vector<16x128xf32>
      %166 = arith.mulf %138, %165 : vector<16x128xf32>
      %cst_48 = arith.constant 0.000000e+00 : f32
      %cst_49 = arith.constant 1.000000e+00 : f32
      %167 = vector.broadcast %cst_48 : f32 to vector<16x128xf32>
      %168 = arith.maximumf %167, %166 : vector<16x128xf32>
      %169 = vector.broadcast %cst_49 : f32 to vector<16x128xf32>
      %170 = arith.minimumf %169, %168 : vector<16x128xf32>
      %171 = vector.broadcast %111 : f32 to vector<16x128xf32>
      %172 = arith.mulf %150, %171 : vector<16x128xf32>
      %cst_50 = arith.constant 0.000000e+00 : f32
      %cst_51 = arith.constant 1.000000e+00 : f32
      %173 = vector.broadcast %cst_50 : f32 to vector<16x128xf32>
      %174 = arith.maximumf %173, %172 : vector<16x128xf32>
      %175 = vector.broadcast %cst_51 : f32 to vector<16x128xf32>
      %176 = arith.minimumf %175, %174 : vector<16x128xf32>
      %177 = arith.addf %164, %170 : vector<16x128xf32>
      %178 = arith.addf %177, %176 : vector<16x128xf32>
      %cst_52 = arith.constant 1.000000e+00 : f32
      %179 = vector.broadcast %cst_52 : f32 to vector<16x128xf32>
      %180 = arith.divf %179, %178 : vector<16x128xf32>
      %181 = arith.mulf %164, %180 : vector<16x128xf32>
      %182 = arith.mulf %170, %180 : vector<16x128xf32>
      %183 = arith.mulf %176, %180 : vector<16x128xf32>
      %184 = vector.broadcast %112 : f32 to vector<16x128xf32>
      %185 = arith.mulf %181, %184 : vector<16x128xf32>
      %186 = vector.broadcast %113 : f32 to vector<16x128xf32>
      %187 = arith.mulf %182, %186 : vector<16x128xf32>
      %188 = arith.addf %185, %187 : vector<16x128xf32>
      %189 = vector.broadcast %114 : f32 to vector<16x128xf32>
      %190 = arith.mulf %183, %189 : vector<16x128xf32>
      %191 = arith.addf %188, %190 : vector<16x128xf32>
      %cst_53 = arith.constant 1.000000e+00 : f32
      %192 = vector.broadcast %cst_53 : f32 to vector<16x128xf32>
      %193 = arith.divf %192, %191 : vector<16x128xf32>
      %c0_54 = arith.constant 0 : index
      %c0_55 = arith.constant 0 : index
      %c0_56 = arith.constant 0 : index
      %194 = vector.load %arg9[%c0_54, %c0_55, %c0_56] : memref<1x16x128xf32, #tpu.memory_space<vmem>>, vector<1x16x128xf32>
      %195 = vector.shape_cast %194 : vector<1x16x128xf32> to vector<16x128xf32>
      %cst_57 = arith.constant 1.000000e-01 : f32
      %196 = vector.broadcast %cst_57 : f32 to vector<16x128xf32>
      %197 = arith.cmpf ogt, %193, %196 : vector<16x128xf32>
      %198 = arith.andi %158, %197 : vector<16x128xi1>
      %cst_58 = arith.constant 1.000000e+02 : f32
      %199 = vector.broadcast %cst_58 : f32 to vector<16x128xf32>
      %200 = arith.cmpf olt, %193, %199 : vector<16x128xf32>
      %201 = arith.andi %198, %200 : vector<16x128xi1>
      %202 = arith.cmpf olt, %193, %195 : vector<16x128xf32>
      %203 = arith.andi %201, %202 : vector<16x128xi1>
      %204 = arith.select %203, %193, %195 : vector<16x128xi1>, vector<16x128xf32>
      %c0_59 = arith.constant 0 : index
      %c0_60 = arith.constant 0 : index
      %c0_61 = arith.constant 0 : index
      %205 = vector.load %arg9[%c0_59, %c0_60, %c0_61] : memref<1x16x128xf32, #tpu.memory_space<vmem>>, vector<1x16x128xf32>
      %206 = vector.shape_cast %205 : vector<1x16x128xf32> to vector<16x128xf32>
      %207 = vector.shape_cast %204 : vector<16x128xf32> to vector<1x16x128xf32>
      tpu.vector_store %arg9[%c0_59, %c0_60, %c0_61], %207 {strides = array<i32>} : memref<1x16x128xf32, #tpu.memory_space<vmem>>, vector<1x16x128xf32>,
      %c0_62 = arith.constant 0 : index
      %c0_63 = arith.constant 0 : index
      %208 = vector.load %arg10[%c0_62, %c0_63] : memref<16x128xi32, #tpu.memory_space<vmem>>, vector<16x128xi32>
      %209 = vector.broadcast %65 : i32 to vector<16x128xi32>
      %210 = arith.select %203, %209, %208 : vector<16x128xi1>, vector<16x128xi32>
      %c0_64 = arith.constant 0 : index
      %c0_65 = arith.constant 0 : index
      %211 = vector.load %arg10[%c0_64, %c0_65] : memref<16x128xi32, #tpu.memory_space<vmem>>, vector<16x128xi32>
      tpu.vector_store %arg10[%c0_64, %c0_65], %210 {strides = array<i32>} : memref<16x128xi32, #tpu.memory_space<vmem>>, vector<16x128xi32>,
    }
    %c0_15 = arith.constant 0 : index
    %c0_16 = arith.constant 0 : index
    %41 = vector.load %arg10[%c0_15, %c0_16] : memref<16x128xi32, #tpu.memory_space<vmem>>, vector<16x128xi32>
    %c0_i32_17 = arith.constant 0 : i32
    %42 = vector.broadcast %c0_i32_17 : i32 to vector<16x128xi32>
    %43 = arith.cmpi sge, %41, %42 : vector<16x128xi32>
    %44 = arith.extui %43 : vector<16x128xi1> to vector<16x128xi32>
    %45 = arith.sitofp %44 : vector<16x128xi32> to vector<16x128xf32>
    %c0_18 = arith.constant 0 : index
    %c0_19 = arith.constant 0 : index
    %c0_20 = arith.constant 0 : index
    %46 = vector.load %arg8[%c0_18, %c0_19, %c0_20] : memref<1x16x128xf32, #tpu.memory_space<vmem>>, vector<1x16x128xf32>
    %47 = vector.shape_cast %46 : vector<1x16x128xf32> to vector<16x128xf32>
    %48 = vector.shape_cast %45 : vector<16x128xf32> to vector<1x16x128xf32>
    tpu.vector_store %arg8[%c0_18, %c0_19, %c0_20], %48 {strides = array<i32>} : memref<1x16x128xf32, #tpu.memory_space<vmem>>, vector<1x16x128xf32>,
    %cst_21 = arith.constant 1.000000e-01 : f32
    %49 = vector.broadcast %cst_21 : f32 to vector<16x128xf32>
    %c0_22 = arith.constant 0 : index
    %c0_23 = arith.constant 0 : index
    %c0_24 = arith.constant 0 : index
    %c0_25 = arith.constant 0 : index
    %50 = vector.load %arg7[%c0_22, %c0_23, %c0_24, %c0_25] : memref<1x3x16x128xf32, #tpu.memory_space<vmem>>, vector<1x1x16x128xf32>
    %51 = vector.shape_cast %50 : vector<1x1x16x128xf32> to vector<16x128xf32>
    %52 = vector.shape_cast %49 : vector<16x128xf32> to vector<1x1x16x128xf32>
    tpu.vector_store %arg7[%c0_22, %c0_23, %c0_24, %c0_25], %52 {strides = array<i32>} : memref<1x3x16x128xf32, #tpu.memory_space<vmem>>, vector<1x1x16x128xf32>,
    %cst_26 = arith.constant 2.000000e-01 : f32
    %53 = vector.broadcast %cst_26 : f32 to vector<16x128xf32>
    %c0_27 = arith.constant 0 : index
    %c1 = arith.constant 1 : index
    %c0_28 = arith.constant 0 : index
    %c0_29 = arith.constant 0 : index
    %54 = vector.load %arg7[%c0_27, %c1, %c0_28, %c0_29] : memref<1x3x16x128xf32, #tpu.memory_space<vmem>>, vector<1x1x16x128xf32>
    %55 = vector.shape_cast %54 : vector<1x1x16x128xf32> to vector<16x128xf32>
    %56 = vector.shape_cast %53 : vector<16x128xf32> to vector<1x1x16x128xf32>
    tpu.vector_store %arg7[%c0_27, %c1, %c0_28, %c0_29], %56 {strides = array<i32>} : memref<1x3x16x128xf32, #tpu.memory_space<vmem>>, vector<1x1x16x128xf32>,
    %cst_30 = arith.constant 3.000000e-01 : f32
    %57 = vector.broadcast %cst_30 : f32 to vector<16x128xf32>
    %c0_31 = arith.constant 0 : index
    %c2 = arith.constant 2 : index
    %c0_32 = arith.constant 0 : index
    %c0_33 = arith.constant 0 : index
    %58 = vector.load %arg7[%c0_31, %c2, %c0_32, %c0_33] : memref<1x3x16x128xf32, #tpu.memory_space<vmem>>, vector<1x1x16x128xf32>
    %59 = vector.shape_cast %58 : vector<1x1x16x128xf32> to vector<16x128xf32>
    %60 = vector.shape_cast %57 : vector<16x128xf32> to vector<1x1x16x128xf32>
    tpu.vector_store %arg7[%c0_31, %c2, %c0_32, %c0_33], %60 {strides = array<i32>} : memref<1x3x16x128xf32, #tpu.memory_space<vmem>>, vector<1x1x16x128xf32>,
    %c0_i32_34 = arith.constant 0 : i32
    %c0_i32_35 = arith.constant 0 : i32
    %61 = arith.subi %6, %c0_i32_35 : i32
    %62 = arith.addi %c0_i32_35, %61 : i32
    %c1_i32_36 = arith.constant 1 : i32
    scf.for %arg11 = %c0_i32_35 to %62 step %c1_i32_36  : i32 {
      %63 = arith.index_cast %3 : i32 to index
      %64 = arith.index_cast %arg11 : i32 to index
      %65 = memref.load %arg5[%63, %64] : memref<2x8xi32, #tpu.memory_space<smem>>
      %c0_37 = arith.constant 0 : index
      %c0_38 = arith.constant 0 : index
      %66 = vector.load %arg10[%c0_37, %c0_38] : memref<16x128xi32, #tpu.memory_space<vmem>>, vector<16x128xi32>
      %67 = vector.broadcast %65 : i32 to vector<16x128xi32>
      %68 = arith.cmpi eq, %66, %67 : vector<16x128xi32>
      %cst_39 = arith.constant 1.000000e+00 : f32
      %cst_40 = arith.constant 0.000000e+00 : f32
      %69 = vector.broadcast %cst_39 : f32 to vector<16x128xf32>
      %70 = vector.broadcast %cst_40 : f32 to vector<16x128xf32>
      %71 = arith.select %68, %69, %70 : vector<16x128xi1>, vector<16x128xf32>
      %72 = vector.shape_cast %71 : vector<16x128xf32> to vector<1x16x128xf32>
      %cst_41 = arith.constant dense<0xFF800000> : vector<1xf32>
      %73 = vector.multi_reduction <maximumf>, %72, %cst_41 [1, 2] : vector<1x16x128xf32> to vector<1xf32>
      %74 = vector.shape_cast %73 : vector<1xf32> to vector<1x1x1xf32>
      %75 = vector.extract %74[0, 0, 0] : f32 from vector<1x1x1xf32>
      %cst_42 = arith.constant 0.000000e+00 : f32
      %76 = arith.cmpf ogt, %75, %cst_42 : f32
      %77 = arith.extui %76 : i1 to i32
      %c0_i32_43 = arith.constant 0 : i32
      %78 = arith.cmpi ne, %77, %c0_i32_43 : i32
      scf.if %78 {
        %c9_i32 = arith.constant 9 : i32
        %79 = arith.muli %65, %c9_i32 : i32
        %c0_i32_44 = arith.constant 0 : i32
        %80 = arith.addi %79, %c0_i32_44 : i32
        %81 = arith.index_cast %arg0 : i32 to index
        %82 = arith.index_cast %80 : i32 to index
        %83 = memref.load %arg3[%81, %82] : memref<2x72xf32, #tpu.memory_space<smem>>
        %c1_i32_45 = arith.constant 1 : i32
        %84 = arith.addi %79, %c1_i32_45 : i32
        %85 = arith.index_cast %arg0 : i32 to index
        %86 = arith.index_cast %84 : i32 to index
        %87 = memref.load %arg3[%85, %86] : memref<2x72xf32, #tpu.memory_space<smem>>
        %c2_i32 = arith.constant 2 : i32
        %88 = arith.addi %79, %c2_i32 : i32
        %89 = arith.index_cast %arg0 : i32 to index
        %90 = arith.index_cast %88 : i32 to index
        %91 = memref.load %arg3[%89, %90] : memref<2x72xf32, #tpu.memory_space<smem>>
        %c3_i32 = arith.constant 3 : i32
        %92 = arith.addi %79, %c3_i32 : i32
        %93 = arith.index_cast %arg0 : i32 to index
        %94 = arith.index_cast %92 : i32 to index
        %95 = memref.load %arg3[%93, %94] : memref<2x72xf32, #tpu.memory_space<smem>>
        %c4_i32 = arith.constant 4 : i32
        %96 = arith.addi %79, %c4_i32 : i32
        %97 = arith.index_cast %arg0 : i32 to index
        %98 = arith.index_cast %96 : i32 to index
        %99 = memref.load %arg3[%97, %98] : memref<2x72xf32, #tpu.memory_space<smem>>
        %c5_i32 = arith.constant 5 : i32
        %100 = arith.addi %79, %c5_i32 : i32
        %101 = arith.index_cast %arg0 : i32 to index
        %102 = arith.index_cast %100 : i32 to index
        %103 = memref.load %arg3[%101, %102] : memref<2x72xf32, #tpu.memory_space<smem>>
        %c6_i32 = arith.constant 6 : i32
        %104 = arith.addi %79, %c6_i32 : i32
        %105 = arith.index_cast %arg0 : i32 to index
        %106 = arith.index_cast %104 : i32 to index
        %107 = memref.load %arg3[%105, %106] : memref<2x72xf32, #tpu.memory_space<smem>>
        %c7_i32 = arith.constant 7 : i32
        %108 = arith.addi %79, %c7_i32 : i32
        %109 = arith.index_cast %arg0 : i32 to index
        %110 = arith.index_cast %108 : i32 to index
        %111 = memref.load %arg3[%109, %110] : memref<2x72xf32, #tpu.memory_space<smem>>
        %c8_i32 = arith.constant 8 : i32
        %112 = arith.addi %79, %c8_i32 : i32
        %113 = arith.index_cast %arg0 : i32 to index
        %114 = arith.index_cast %112 : i32 to index
        %115 = memref.load %arg3[%113, %114] : memref<2x72xf32, #tpu.memory_space<smem>>
        %116 = arith.subf %87, %99 : f32
        %117 = arith.mulf %107, %116 : f32
        %118 = arith.subf %99, %111 : f32
        %119 = arith.mulf %83, %118 : f32
        %120 = arith.addf %117, %119 : f32
        %121 = arith.subf %111, %87 : f32
        %122 = arith.mulf %95, %121 : f32
        %123 = arith.addf %120, %122 : f32
        %cst_46 = arith.constant 1.000000e+00 : f32
        %124 = arith.divf %cst_46, %123 : f32
        %cst_47 = arith.constant 1.000000e+00 : f32
        %125 = arith.divf %cst_47, %91 : f32
        %cst_48 = arith.constant 1.000000e+00 : f32
        %126 = arith.divf %cst_48, %103 : f32
        %cst_49 = arith.constant 1.000000e+00 : f32
        %127 = arith.divf %cst_49, %115 : f32
        %128 = arith.subf %99, %111 : f32
        %129 = vector.broadcast %128 : f32 to vector<16x128xf32>
        %130 = arith.mulf %129, %32 : vector<16x128xf32>
        %131 = arith.subf %107, %95 : f32
        %132 = vector.broadcast %131 : f32 to vector<16x128xf32>
        %133 = arith.mulf %132, %24 : vector<16x128xf32>
        %134 = arith.addf %130, %133 : vector<16x128xf32>
        %135 = arith.mulf %95, %111 : f32
        %136 = arith.mulf %107, %99 : f32
        %137 = arith.subf %135, %136 : f32
        %138 = vector.broadcast %137 : f32 to vector<16x128xf32>
        %139 = arith.addf %134, %138 : vector<16x128xf32>
        %140 = arith.subf %111, %87 : f32
        %141 = vector.broadcast %140 : f32 to vector<16x128xf32>
        %142 = arith.mulf %141, %32 : vector<16x128xf32>
        %143 = arith.subf %83, %107 : f32
        %144 = vector.broadcast %143 : f32 to vector<16x128xf32>
        %145 = arith.mulf %144, %24 : vector<16x128xf32>
        %146 = arith.addf %142, %145 : vector<16x128xf32>
        %147 = arith.mulf %107, %87 : f32
        %148 = arith.mulf %83, %111 : f32
        %149 = arith.subf %147, %148 : f32
        %150 = vector.broadcast %149 : f32 to vector<16x128xf32>
        %151 = arith.addf %146, %150 : vector<16x128xf32>
        %152 = arith.subf %87, %99 : f32
        %153 = vector.broadcast %152 : f32 to vector<16x128xf32>
        %154 = arith.mulf %153, %32 : vector<16x128xf32>
        %155 = arith.subf %95, %83 : f32
        %156 = vector.broadcast %155 : f32 to vector<16x128xf32>
        %157 = arith.mulf %156, %24 : vector<16x128xf32>
        %158 = arith.addf %154, %157 : vector<16x128xf32>
        %159 = arith.mulf %83, %99 : f32
        %160 = arith.mulf %95, %87 : f32
        %161 = arith.subf %159, %160 : f32
        %162 = vector.broadcast %161 : f32 to vector<16x128xf32>
        %163 = arith.addf %158, %162 : vector<16x128xf32>
        %164 = vector.broadcast %124 : f32 to vector<16x128xf32>
        %165 = arith.mulf %139, %164 : vector<16x128xf32>
        %cst_50 = arith.constant 0.000000e+00 : f32
        %cst_51 = arith.constant 1.000000e+00 : f32
        %166 = vector.broadcast %cst_50 : f32 to vector<16x128xf32>
        %167 = arith.maximumf %166, %165 : vector<16x128xf32>
        %168 = vector.broadcast %cst_51 : f32 to vector<16x128xf32>
        %169 = arith.minimumf %168, %167 : vector<16x128xf32>
        %170 = vector.broadcast %124 : f32 to vector<16x128xf32>
        %171 = arith.mulf %151, %170 : vector<16x128xf32>
        %cst_52 = arith.constant 0.000000e+00 : f32
        %cst_53 = arith.constant 1.000000e+00 : f32
        %172 = vector.broadcast %cst_52 : f32 to vector<16x128xf32>
        %173 = arith.maximumf %172, %171 : vector<16x128xf32>
        %174 = vector.broadcast %cst_53 : f32 to vector<16x128xf32>
        %175 = arith.minimumf %174, %173 : vector<16x128xf32>
        %176 = vector.broadcast %124 : f32 to vector<16x128xf32>
        %177 = arith.mulf %163, %176 : vector<16x128xf32>
        %cst_54 = arith.constant 0.000000e+00 : f32
        %cst_55 = arith.constant 1.000000e+00 : f32
        %178 = vector.broadcast %cst_54 : f32 to vector<16x128xf32>
        %179 = arith.maximumf %178, %177 : vector<16x128xf32>
        %180 = vector.broadcast %cst_55 : f32 to vector<16x128xf32>
        %181 = arith.minimumf %180, %179 : vector<16x128xf32>
        %182 = arith.addf %169, %175 : vector<16x128xf32>
        %183 = arith.addf %182, %181 : vector<16x128xf32>
        %cst_56 = arith.constant 1.000000e+00 : f32
        %184 = vector.broadcast %cst_56 : f32 to vector<16x128xf32>
        %185 = arith.divf %184, %183 : vector<16x128xf32>
        %c0_57 = arith.constant 0 : index
        %c0_58 = arith.constant 0 : index
        %c0_59 = arith.constant 0 : index
        %186 = vector.load %arg9[%c0_57, %c0_58, %c0_59] : memref<1x16x128xf32, #tpu.memory_space<vmem>>, vector<1x16x128xf32>
        %187 = vector.shape_cast %186 : vector<1x16x128xf32> to vector<16x128xf32>
        %188 = arith.mulf %169, %185 : vector<16x128xf32>
        %189 = arith.mulf %188, %187 : vector<16x128xf32>
        %cst_60 = arith.constant 1.000000e+00 : f32
        %190 = arith.mulf %cst_60, %125 : f32
        %191 = vector.broadcast %190 : f32 to vector<16x128xf32>
        %192 = arith.mulf %189, %191 : vector<16x128xf32>
        %cst_61 = arith.constant 0.000000e+00 : f32
        %193 = vector.broadcast %cst_61 : f32 to vector<16x128xf32>
        %194 = arith.maximumf %192, %193 : vector<16x128xf32>
        %cst_62 = arith.constant 9.990000e-01 : f32
        %195 = vector.broadcast %cst_62 : f32 to vector<16x128xf32>
        %196 = arith.minimumf %194, %195 : vector<16x128xf32>
        %197 = math.floor %196 : vector<16x128xf32>
        %198 = arith.subf %196, %197 : vector<16x128xf32>
        %cst_63 = arith.constant 0.000000e+00 : f32
        %199 = vector.broadcast %cst_63 : f32 to vector<16x128xf32>
        %200 = arith.cmpf oeq, %197, %199 : vector<16x128xf32>
        %cst_64 = arith.constant 1.000000e+00 : f32
        %201 = vector.broadcast %cst_64 : f32 to vector<16x128xf32>
        %202 = arith.subf %201, %198 : vector<16x128xf32>
        %cst_65 = arith.constant 0.000000e+00 : f32
        %203 = vector.broadcast %cst_65 : f32 to vector<16x128xf32>
        %204 = arith.select %200, %202, %203 : vector<16x128xi1>, vector<16x128xf32>
        %cst_66 = arith.constant 1.000000e+00 : f32
        %205 = vector.broadcast %cst_66 : f32 to vector<16x128xf32>
        %206 = arith.cmpf oeq, %197, %205 : vector<16x128xf32>
        %cst_67 = arith.constant 1.000000e+00 : f32
        %207 = vector.broadcast %cst_67 : f32 to vector<16x128xf32>
        %208 = arith.subf %207, %198 : vector<16x128xf32>
        %cst_68 = arith.constant 0.000000e+00 : f32
        %209 = vector.broadcast %cst_68 : f32 to vector<16x128xf32>
        %210 = arith.select %206, %208, %209 : vector<16x128xi1>, vector<16x128xf32>
        %cst_69 = arith.constant 0.000000e+00 : f32
        %211 = vector.broadcast %cst_69 : f32 to vector<16x128xf32>
        %212 = arith.cmpf oeq, %197, %211 : vector<16x128xf32>
        %cst_70 = arith.constant 0.000000e+00 : f32
        %213 = vector.broadcast %cst_70 : f32 to vector<16x128xf32>
        %214 = arith.select %212, %198, %213 : vector<16x128xi1>, vector<16x128xf32>
        %215 = arith.addf %210, %214 : vector<16x128xf32>
        %216 = arith.mulf %175, %185 : vector<16x128xf32>
        %217 = arith.mulf %216, %187 : vector<16x128xf32>
        %cst_71 = arith.constant 1.000000e+00 : f32
        %218 = arith.mulf %cst_71, %126 : f32
        %219 = vector.broadcast %218 : f32 to vector<16x128xf32>
        %220 = arith.mulf %217, %219 : vector<16x128xf32>
        %cst_72 = arith.constant 0.000000e+00 : f32
        %221 = vector.broadcast %cst_72 : f32 to vector<16x128xf32>
        %222 = arith.maximumf %220, %221 : vector<16x128xf32>
        %cst_73 = arith.constant 9.990000e-01 : f32
        %223 = vector.broadcast %cst_73 : f32 to vector<16x128xf32>
        %224 = arith.minimumf %222, %223 : vector<16x128xf32>
        %225 = math.floor %224 : vector<16x128xf32>
        %226 = arith.subf %224, %225 : vector<16x128xf32>
        %cst_74 = arith.constant 0.000000e+00 : f32
        %227 = vector.broadcast %cst_74 : f32 to vector<16x128xf32>
        %228 = arith.cmpf oeq, %225, %227 : vector<16x128xf32>
        %cst_75 = arith.constant 1.000000e+00 : f32
        %229 = vector.broadcast %cst_75 : f32 to vector<16x128xf32>
        %230 = arith.subf %229, %226 : vector<16x128xf32>
        %cst_76 = arith.constant 0.000000e+00 : f32
        %231 = vector.broadcast %cst_76 : f32 to vector<16x128xf32>
        %232 = arith.select %228, %230, %231 : vector<16x128xi1>, vector<16x128xf32>
        %cst_77 = arith.constant 1.000000e+00 : f32
        %233 = vector.broadcast %cst_77 : f32 to vector<16x128xf32>
        %234 = arith.cmpf oeq, %225, %233 : vector<16x128xf32>
        %cst_78 = arith.constant 1.000000e+00 : f32
        %235 = vector.broadcast %cst_78 : f32 to vector<16x128xf32>
        %236 = arith.subf %235, %226 : vector<16x128xf32>
        %cst_79 = arith.constant 0.000000e+00 : f32
        %237 = vector.broadcast %cst_79 : f32 to vector<16x128xf32>
        %238 = arith.select %234, %236, %237 : vector<16x128xi1>, vector<16x128xf32>
        %cst_80 = arith.constant 0.000000e+00 : f32
        %239 = vector.broadcast %cst_80 : f32 to vector<16x128xf32>
        %240 = arith.cmpf oeq, %225, %239 : vector<16x128xf32>
        %cst_81 = arith.constant 0.000000e+00 : f32
        %241 = vector.broadcast %cst_81 : f32 to vector<16x128xf32>
        %242 = arith.select %240, %226, %241 : vector<16x128xi1>, vector<16x128xf32>
        %243 = arith.addf %238, %242 : vector<16x128xf32>
        %244 = arith.mulf %181, %185 : vector<16x128xf32>
        %245 = arith.mulf %244, %187 : vector<16x128xf32>
        %cst_82 = arith.constant 1.000000e+00 : f32
        %246 = arith.mulf %cst_82, %127 : f32
        %247 = vector.broadcast %246 : f32 to vector<16x128xf32>
        %248 = arith.mulf %245, %247 : vector<16x128xf32>
        %cst_83 = arith.constant 0.000000e+00 : f32
        %249 = vector.broadcast %cst_83 : f32 to vector<16x128xf32>
        %250 = arith.maximumf %248, %249 : vector<16x128xf32>
        %cst_84 = arith.constant 9.990000e-01 : f32
        %251 = vector.broadcast %cst_84 : f32 to vector<16x128xf32>
        %252 = arith.minimumf %250, %251 : vector<16x128xf32>
        %253 = math.floor %252 : vector<16x128xf32>
        %254 = arith.subf %252, %253 : vector<16x128xf32>
        %cst_85 = arith.constant 0.000000e+00 : f32
        %255 = vector.broadcast %cst_85 : f32 to vector<16x128xf32>
        %256 = arith.cmpf oeq, %253, %255 : vector<16x128xf32>
        %cst_86 = arith.constant 1.000000e+00 : f32
        %257 = vector.broadcast %cst_86 : f32 to vector<16x128xf32>
        %258 = arith.subf %257, %254 : vector<16x128xf32>
        %cst_87 = arith.constant 0.000000e+00 : f32
        %259 = vector.broadcast %cst_87 : f32 to vector<16x128xf32>
        %260 = arith.select %256, %258, %259 : vector<16x128xi1>, vector<16x128xf32>
        %cst_88 = arith.constant 1.000000e+00 : f32
        %261 = vector.broadcast %cst_88 : f32 to vector<16x128xf32>
        %262 = arith.cmpf oeq, %253, %261 : vector<16x128xf32>
        %cst_89 = arith.constant 1.000000e+00 : f32
        %263 = vector.broadcast %cst_89 : f32 to vector<16x128xf32>
        %264 = arith.subf %263, %254 : vector<16x128xf32>
        %cst_90 = arith.constant 0.000000e+00 : f32
        %265 = vector.broadcast %cst_90 : f32 to vector<16x128xf32>
        %266 = arith.select %262, %264, %265 : vector<16x128xi1>, vector<16x128xf32>
        %cst_91 = arith.constant 0.000000e+00 : f32
        %267 = vector.broadcast %cst_91 : f32 to vector<16x128xf32>
        %268 = arith.cmpf oeq, %253, %267 : vector<16x128xf32>
        %cst_92 = arith.constant 0.000000e+00 : f32
        %269 = vector.broadcast %cst_92 : f32 to vector<16x128xf32>
        %270 = arith.select %268, %254, %269 : vector<16x128xi1>, vector<16x128xf32>
        %271 = arith.addf %266, %270 : vector<16x128xf32>
        %c24_i32 = arith.constant 24 : i32
        %272 = arith.muli %65, %c24_i32 : i32
        %c0_i32_93 = arith.constant 0 : i32
        %273 = arith.addi %272, %c0_i32_93 : i32
        %c0_i32_94 = arith.constant 0 : i32
        %274 = arith.addi %273, %c0_i32_94 : i32
        %275 = arith.index_cast %arg0 : i32 to index
        %276 = arith.index_cast %274 : i32 to index
        %277 = memref.load %arg6[%275, %276] : memref<2x192xf32, #tpu.memory_space<smem>>
        %278 = vector.broadcast %277 : f32 to vector<16x128xf32>
        %279 = arith.mulf %260, %278 : vector<16x128xf32>
        %c3_i32_95 = arith.constant 3 : i32
        %280 = arith.addi %272, %c3_i32_95 : i32
        %c0_i32_96 = arith.constant 0 : i32
        %281 = arith.addi %280, %c0_i32_96 : i32
        %282 = arith.index_cast %arg0 : i32 to index
        %283 = arith.index_cast %281 : i32 to index
        %284 = memref.load %arg6[%282, %283] : memref<2x192xf32, #tpu.memory_space<smem>>
        %285 = vector.broadcast %284 : f32 to vector<16x128xf32>
        %286 = arith.mulf %271, %285 : vector<16x128xf32>
        %287 = arith.addf %279, %286 : vector<16x128xf32>
        %288 = arith.mulf %232, %287 : vector<16x128xf32>
        %c6_i32_97 = arith.constant 6 : i32
        %289 = arith.addi %272, %c6_i32_97 : i32
        %c0_i32_98 = arith.constant 0 : i32
        %290 = arith.addi %289, %c0_i32_98 : i32
        %291 = arith.index_cast %arg0 : i32 to index
        %292 = arith.index_cast %290 : i32 to index
        %293 = memref.load %arg6[%291, %292] : memref<2x192xf32, #tpu.memory_space<smem>>
        %294 = vector.broadcast %293 : f32 to vector<16x128xf32>
        %295 = arith.mulf %260, %294 : vector<16x128xf32>
        %c9_i32_99 = arith.constant 9 : i32
        %296 = arith.addi %272, %c9_i32_99 : i32
        %c0_i32_100 = arith.constant 0 : i32
        %297 = arith.addi %296, %c0_i32_100 : i32
        %298 = arith.index_cast %arg0 : i32 to index
        %299 = arith.index_cast %297 : i32 to index
        %300 = memref.load %arg6[%298, %299] : memref<2x192xf32, #tpu.memory_space<smem>>
        %301 = vector.broadcast %300 : f32 to vector<16x128xf32>
        %302 = arith.mulf %271, %301 : vector<16x128xf32>
        %303 = arith.addf %295, %302 : vector<16x128xf32>
        %304 = arith.mulf %243, %303 : vector<16x128xf32>
        %305 = arith.addf %288, %304 : vector<16x128xf32>
        %306 = arith.mulf %204, %305 : vector<16x128xf32>
        %c12_i32 = arith.constant 12 : i32
        %307 = arith.addi %272, %c12_i32 : i32
        %c0_i32_101 = arith.constant 0 : i32
        %308 = arith.addi %307, %c0_i32_101 : i32
        %309 = arith.index_cast %arg0 : i32 to index
        %310 = arith.index_cast %308 : i32 to index
        %311 = memref.load %arg6[%309, %310] : memref<2x192xf32, #tpu.memory_space<smem>>
        %312 = vector.broadcast %311 : f32 to vector<16x128xf32>
        %313 = arith.mulf %260, %312 : vector<16x128xf32>
        %c15_i32 = arith.constant 15 : i32
        %314 = arith.addi %272, %c15_i32 : i32
        %c0_i32_102 = arith.constant 0 : i32
        %315 = arith.addi %314, %c0_i32_102 : i32
        %316 = arith.index_cast %arg0 : i32 to index
        %317 = arith.index_cast %315 : i32 to index
        %318 = memref.load %arg6[%316, %317] : memref<2x192xf32, #tpu.memory_space<smem>>
        %319 = vector.broadcast %318 : f32 to vector<16x128xf32>
        %320 = arith.mulf %271, %319 : vector<16x128xf32>
        %321 = arith.addf %313, %320 : vector<16x128xf32>
        %322 = arith.mulf %232, %321 : vector<16x128xf32>
        %c18_i32 = arith.constant 18 : i32
        %323 = arith.addi %272, %c18_i32 : i32
        %c0_i32_103 = arith.constant 0 : i32
        %324 = arith.addi %323, %c0_i32_103 : i32
        %325 = arith.index_cast %arg0 : i32 to index
        %326 = arith.index_cast %324 : i32 to index
        %327 = memref.load %arg6[%325, %326] : memref<2x192xf32, #tpu.memory_space<smem>>
        %328 = vector.broadcast %327 : f32 to vector<16x128xf32>
        %329 = arith.mulf %260, %328 : vector<16x128xf32>
        %c21_i32 = arith.constant 21 : i32
        %330 = arith.addi %272, %c21_i32 : i32
        %c0_i32_104 = arith.constant 0 : i32
        %331 = arith.addi %330, %c0_i32_104 : i32
        %332 = arith.index_cast %arg0 : i32 to index
        %333 = arith.index_cast %331 : i32 to index
        %334 = memref.load %arg6[%332, %333] : memref<2x192xf32, #tpu.memory_space<smem>>
        %335 = vector.broadcast %334 : f32 to vector<16x128xf32>
        %336 = arith.mulf %271, %335 : vector<16x128xf32>
        %337 = arith.addf %329, %336 : vector<16x128xf32>
        %338 = arith.mulf %243, %337 : vector<16x128xf32>
        %339 = arith.addf %322, %338 : vector<16x128xf32>
        %340 = arith.mulf %215, %339 : vector<16x128xf32>
        %341 = arith.addf %306, %340 : vector<16x128xf32>
        %c0_105 = arith.constant 0 : index
        %c0_106 = arith.constant 0 : index
        %c0_107 = arith.constant 0 : index
        %c0_108 = arith.constant 0 : index
        %342 = vector.load %arg7[%c0_105, %c0_106, %c0_107, %c0_108] : memref<1x3x16x128xf32, #tpu.memory_space<vmem>>, vector<1x1x16x128xf32>
        %343 = vector.shape_cast %342 : vector<1x1x16x128xf32> to vector<16x128xf32>
        %344 = arith.select %68, %341, %343 : vector<16x128xi1>, vector<16x128xf32>
        %c0_109 = arith.constant 0 : index
        %c0_110 = arith.constant 0 : index
        %c0_111 = arith.constant 0 : index
        %c0_112 = arith.constant 0 : index
        %345 = vector.load %arg7[%c0_109, %c0_110, %c0_111, %c0_112] : memref<1x3x16x128xf32, #tpu.memory_space<vmem>>, vector<1x1x16x128xf32>
        %346 = vector.shape_cast %345 : vector<1x1x16x128xf32> to vector<16x128xf32>
        %347 = vector.shape_cast %344 : vector<16x128xf32> to vector<1x1x16x128xf32>
        tpu.vector_store %arg7[%c0_109, %c0_110, %c0_111, %c0_112], %347 {strides = array<i32>} : memref<1x3x16x128xf32, #tpu.memory_space<vmem>>, vector<1x1x16x128xf32>,
        %c0_i32_113 = arith.constant 0 : i32
        %348 = arith.addi %272, %c0_i32_113 : i32
        %c1_i32_114 = arith.constant 1 : i32
        %349 = arith.addi %348, %c1_i32_114 : i32
        %350 = arith.index_cast %arg0 : i32 to index
        %351 = arith.index_cast %349 : i32 to index
        %352 = memref.load %arg6[%350, %351] : memref<2x192xf32, #tpu.memory_space<smem>>
        %353 = vector.broadcast %352 : f32 to vector<16x128xf32>
        %354 = arith.mulf %260, %353 : vector<16x128xf32>
        %c3_i32_115 = arith.constant 3 : i32
        %355 = arith.addi %272, %c3_i32_115 : i32
        %c1_i32_116 = arith.constant 1 : i32
        %356 = arith.addi %355, %c1_i32_116 : i32
        %357 = arith.index_cast %arg0 : i32 to index
        %358 = arith.index_cast %356 : i32 to index
        %359 = memref.load %arg6[%357, %358] : memref<2x192xf32, #tpu.memory_space<smem>>
        %360 = vector.broadcast %359 : f32 to vector<16x128xf32>
        %361 = arith.mulf %271, %360 : vector<16x128xf32>
        %362 = arith.addf %354, %361 : vector<16x128xf32>
        %363 = arith.mulf %232, %362 : vector<16x128xf32>
        %c6_i32_117 = arith.constant 6 : i32
        %364 = arith.addi %272, %c6_i32_117 : i32
        %c1_i32_118 = arith.constant 1 : i32
        %365 = arith.addi %364, %c1_i32_118 : i32
        %366 = arith.index_cast %arg0 : i32 to index
        %367 = arith.index_cast %365 : i32 to index
        %368 = memref.load %arg6[%366, %367] : memref<2x192xf32, #tpu.memory_space<smem>>
        %369 = vector.broadcast %368 : f32 to vector<16x128xf32>
        %370 = arith.mulf %260, %369 : vector<16x128xf32>
        %c9_i32_119 = arith.constant 9 : i32
        %371 = arith.addi %272, %c9_i32_119 : i32
        %c1_i32_120 = arith.constant 1 : i32
        %372 = arith.addi %371, %c1_i32_120 : i32
        %373 = arith.index_cast %arg0 : i32 to index
        %374 = arith.index_cast %372 : i32 to index
        %375 = memref.load %arg6[%373, %374] : memref<2x192xf32, #tpu.memory_space<smem>>
        %376 = vector.broadcast %375 : f32 to vector<16x128xf32>
        %377 = arith.mulf %271, %376 : vector<16x128xf32>
        %378 = arith.addf %370, %377 : vector<16x128xf32>
        %379 = arith.mulf %243, %378 : vector<16x128xf32>
        %380 = arith.addf %363, %379 : vector<16x128xf32>
        %381 = arith.mulf %204, %380 : vector<16x128xf32>
        %c12_i32_121 = arith.constant 12 : i32
        %382 = arith.addi %272, %c12_i32_121 : i32
        %c1_i32_122 = arith.constant 1 : i32
        %383 = arith.addi %382, %c1_i32_122 : i32
        %384 = arith.index_cast %arg0 : i32 to index
        %385 = arith.index_cast %383 : i32 to index
        %386 = memref.load %arg6[%384, %385] : memref<2x192xf32, #tpu.memory_space<smem>>
        %387 = vector.broadcast %386 : f32 to vector<16x128xf32>
        %388 = arith.mulf %260, %387 : vector<16x128xf32>
        %c15_i32_123 = arith.constant 15 : i32
        %389 = arith.addi %272, %c15_i32_123 : i32
        %c1_i32_124 = arith.constant 1 : i32
        %390 = arith.addi %389, %c1_i32_124 : i32
        %391 = arith.index_cast %arg0 : i32 to index
        %392 = arith.index_cast %390 : i32 to index
        %393 = memref.load %arg6[%391, %392] : memref<2x192xf32, #tpu.memory_space<smem>>
        %394 = vector.broadcast %393 : f32 to vector<16x128xf32>
        %395 = arith.mulf %271, %394 : vector<16x128xf32>
        %396 = arith.addf %388, %395 : vector<16x128xf32>
        %397 = arith.mulf %232, %396 : vector<16x128xf32>
        %c18_i32_125 = arith.constant 18 : i32
        %398 = arith.addi %272, %c18_i32_125 : i32
        %c1_i32_126 = arith.constant 1 : i32
        %399 = arith.addi %398, %c1_i32_126 : i32
        %400 = arith.index_cast %arg0 : i32 to index
        %401 = arith.index_cast %399 : i32 to index
        %402 = memref.load %arg6[%400, %401] : memref<2x192xf32, #tpu.memory_space<smem>>
        %403 = vector.broadcast %402 : f32 to vector<16x128xf32>
        %404 = arith.mulf %260, %403 : vector<16x128xf32>
        %c21_i32_127 = arith.constant 21 : i32
        %405 = arith.addi %272, %c21_i32_127 : i32
        %c1_i32_128 = arith.constant 1 : i32
        %406 = arith.addi %405, %c1_i32_128 : i32
        %407 = arith.index_cast %arg0 : i32 to index
        %408 = arith.index_cast %406 : i32 to index
        %409 = memref.load %arg6[%407, %408] : memref<2x192xf32, #tpu.memory_space<smem>>
        %410 = vector.broadcast %409 : f32 to vector<16x128xf32>
        %411 = arith.mulf %271, %410 : vector<16x128xf32>
        %412 = arith.addf %404, %411 : vector<16x128xf32>
        %413 = arith.mulf %243, %412 : vector<16x128xf32>
        %414 = arith.addf %397, %413 : vector<16x128xf32>
        %415 = arith.mulf %215, %414 : vector<16x128xf32>
        %416 = arith.addf %381, %415 : vector<16x128xf32>
        %c0_129 = arith.constant 0 : index
        %c1_130 = arith.constant 1 : index
        %c0_131 = arith.constant 0 : index
        %c0_132 = arith.constant 0 : index
        %417 = vector.load %arg7[%c0_129, %c1_130, %c0_131, %c0_132] : memref<1x3x16x128xf32, #tpu.memory_space<vmem>>, vector<1x1x16x128xf32>
        %418 = vector.shape_cast %417 : vector<1x1x16x128xf32> to vector<16x128xf32>
        %419 = arith.select %68, %416, %418 : vector<16x128xi1>, vector<16x128xf32>
        %c0_133 = arith.constant 0 : index
        %c1_134 = arith.constant 1 : index
        %c0_135 = arith.constant 0 : index
        %c0_136 = arith.constant 0 : index
        %420 = vector.load %arg7[%c0_133, %c1_134, %c0_135, %c0_136] : memref<1x3x16x128xf32, #tpu.memory_space<vmem>>, vector<1x1x16x128xf32>
        %421 = vector.shape_cast %420 : vector<1x1x16x128xf32> to vector<16x128xf32>
        %422 = vector.shape_cast %419 : vector<16x128xf32> to vector<1x1x16x128xf32>
        tpu.vector_store %arg7[%c0_133, %c1_134, %c0_135, %c0_136], %422 {strides = array<i32>} : memref<1x3x16x128xf32, #tpu.memory_space<vmem>>, vector<1x1x16x128xf32>,
        %c0_i32_137 = arith.constant 0 : i32
        %423 = arith.addi %272, %c0_i32_137 : i32
        %c2_i32_138 = arith.constant 2 : i32
        %424 = arith.addi %423, %c2_i32_138 : i32
        %425 = arith.index_cast %arg0 : i32 to index
        %426 = arith.index_cast %424 : i32 to index
        %427 = memref.load %arg6[%425, %426] : memref<2x192xf32, #tpu.memory_space<smem>>
        %428 = vector.broadcast %427 : f32 to vector<16x128xf32>
        %429 = arith.mulf %260, %428 : vector<16x128xf32>
        %c3_i32_139 = arith.constant 3 : i32
        %430 = arith.addi %272, %c3_i32_139 : i32
        %c2_i32_140 = arith.constant 2 : i32
        %431 = arith.addi %430, %c2_i32_140 : i32
        %432 = arith.index_cast %arg0 : i32 to index
        %433 = arith.index_cast %431 : i32 to index
        %434 = memref.load %arg6[%432, %433] : memref<2x192xf32, #tpu.memory_space<smem>>
        %435 = vector.broadcast %434 : f32 to vector<16x128xf32>
        %436 = arith.mulf %271, %435 : vector<16x128xf32>
        %437 = arith.addf %429, %436 : vector<16x128xf32>
        %438 = arith.mulf %232, %437 : vector<16x128xf32>
        %c6_i32_141 = arith.constant 6 : i32
        %439 = arith.addi %272, %c6_i32_141 : i32
        %c2_i32_142 = arith.constant 2 : i32
        %440 = arith.addi %439, %c2_i32_142 : i32
        %441 = arith.index_cast %arg0 : i32 to index
        %442 = arith.index_cast %440 : i32 to index
        %443 = memref.load %arg6[%441, %442] : memref<2x192xf32, #tpu.memory_space<smem>>
        %444 = vector.broadcast %443 : f32 to vector<16x128xf32>
        %445 = arith.mulf %260, %444 : vector<16x128xf32>
        %c9_i32_143 = arith.constant 9 : i32
        %446 = arith.addi %272, %c9_i32_143 : i32
        %c2_i32_144 = arith.constant 2 : i32
        %447 = arith.addi %446, %c2_i32_144 : i32
        %448 = arith.index_cast %arg0 : i32 to index
        %449 = arith.index_cast %447 : i32 to index
        %450 = memref.load %arg6[%448, %449] : memref<2x192xf32, #tpu.memory_space<smem>>
        %451 = vector.broadcast %450 : f32 to vector<16x128xf32>
        %452 = arith.mulf %271, %451 : vector<16x128xf32>
        %453 = arith.addf %445, %452 : vector<16x128xf32>
        %454 = arith.mulf %243, %453 : vector<16x128xf32>
        %455 = arith.addf %438, %454 : vector<16x128xf32>
        %456 = arith.mulf %204, %455 : vector<16x128xf32>
        %c12_i32_145 = arith.constant 12 : i32
        %457 = arith.addi %272, %c12_i32_145 : i32
        %c2_i32_146 = arith.constant 2 : i32
        %458 = arith.addi %457, %c2_i32_146 : i32
        %459 = arith.index_cast %arg0 : i32 to index
        %460 = arith.index_cast %458 : i32 to index
        %461 = memref.load %arg6[%459, %460] : memref<2x192xf32, #tpu.memory_space<smem>>
        %462 = vector.broadcast %461 : f32 to vector<16x128xf32>
        %463 = arith.mulf %260, %462 : vector<16x128xf32>
        %c15_i32_147 = arith.constant 15 : i32
        %464 = arith.addi %272, %c15_i32_147 : i32
        %c2_i32_148 = arith.constant 2 : i32
        %465 = arith.addi %464, %c2_i32_148 : i32
        %466 = arith.index_cast %arg0 : i32 to index
        %467 = arith.index_cast %465 : i32 to index
        %468 = memref.load %arg6[%466, %467] : memref<2x192xf32, #tpu.memory_space<smem>>
        %469 = vector.broadcast %468 : f32 to vector<16x128xf32>
        %470 = arith.mulf %271, %469 : vector<16x128xf32>
        %471 = arith.addf %463, %470 : vector<16x128xf32>
        %472 = arith.mulf %232, %471 : vector<16x128xf32>
        %c18_i32_149 = arith.constant 18 : i32
        %473 = arith.addi %272, %c18_i32_149 : i32
        %c2_i32_150 = arith.constant 2 : i32
        %474 = arith.addi %473, %c2_i32_150 : i32
        %475 = arith.index_cast %arg0 : i32 to index
        %476 = arith.index_cast %474 : i32 to index
        %477 = memref.load %arg6[%475, %476] : memref<2x192xf32, #tpu.memory_space<smem>>
        %478 = vector.broadcast %477 : f32 to vector<16x128xf32>
        %479 = arith.mulf %260, %478 : vector<16x128xf32>
        %c21_i32_151 = arith.constant 21 : i32
        %480 = arith.addi %272, %c21_i32_151 : i32
        %c2_i32_152 = arith.constant 2 : i32
        %481 = arith.addi %480, %c2_i32_152 : i32
        %482 = arith.index_cast %arg0 : i32 to index
        %483 = arith.index_cast %481 : i32 to index
        %484 = memref.load %arg6[%482, %483] : memref<2x192xf32, #tpu.memory_space<smem>>
        %485 = vector.broadcast %484 : f32 to vector<16x128xf32>
        %486 = arith.mulf %271, %485 : vector<16x128xf32>
        %487 = arith.addf %479, %486 : vector<16x128xf32>
        %488 = arith.mulf %243, %487 : vector<16x128xf32>
        %489 = arith.addf %472, %488 : vector<16x128xf32>
        %490 = arith.mulf %215, %489 : vector<16x128xf32>
        %491 = arith.addf %456, %490 : vector<16x128xf32>
        %c0_153 = arith.constant 0 : index
        %c2_154 = arith.constant 2 : index
        %c0_155 = arith.constant 0 : index
        %c0_156 = arith.constant 0 : index
        %492 = vector.load %arg7[%c0_153, %c2_154, %c0_155, %c0_156] : memref<1x3x16x128xf32, #tpu.memory_space<vmem>>, vector<1x1x16x128xf32>
        %493 = vector.shape_cast %492 : vector<1x1x16x128xf32> to vector<16x128xf32>
        %494 = arith.select %68, %491, %493 : vector<16x128xi1>, vector<16x128xf32>
        %c0_157 = arith.constant 0 : index
        %c2_158 = arith.constant 2 : index
        %c0_159 = arith.constant 0 : index
        %c0_160 = arith.constant 0 : index
        %495 = vector.load %arg7[%c0_157, %c2_158, %c0_159, %c0_160] : memref<1x3x16x128xf32, #tpu.memory_space<vmem>>, vector<1x1x16x128xf32>
        %496 = vector.shape_cast %495 : vector<1x1x16x128xf32> to vector<16x128xf32>
        %497 = vector.shape_cast %494 : vector<16x128xf32> to vector<1x1x16x128xf32>
        tpu.vector_store %arg7[%c0_157, %c2_158, %c0_159, %c0_160], %497 {strides = array<i32>} : memref<1x3x16x128xf32, #tpu.memory_space<vmem>>, vector<1x1x16x128xf32>,
      } else {
      }
    }
    return
  }
  func.func @transform_0(%arg0: i32, %arg1: i32, %arg2: i32, %arg3: memref<2x72xf32, #tpu.memory_space<smem>>, %arg4: memref<2x1xi32, #tpu.memory_space<smem>>, %arg5: memref<2x8xi32, #tpu.memory_space<smem>>, %arg6: memref<2x192xf32, #tpu.memory_space<smem>>) -> (i32, i32, i32, i32) {
    %c0_i32 = arith.constant 0 : i32
    %c0_i32_0 = arith.constant 0 : i32
    return %arg0, %c0_i32, %arg1, %arg2 : i32, i32, i32, i32
  }
  func.func @transform_1(%arg0: i32, %arg1: i32, %arg2: i32, %arg3: memref<2x72xf32, #tpu.memory_space<smem>>, %arg4: memref<2x1xi32, #tpu.memory_space<smem>>, %arg5: memref<2x8xi32, #tpu.memory_space<smem>>, %arg6: memref<2x192xf32, #tpu.memory_space<smem>>) -> (i32, i32, i32) {
    %c0_i32 = arith.constant 0 : i32
    return %arg0, %arg1, %arg2 : i32, i32, i32
  }
  func.func @transform_2(%arg0: i32, %arg1: i32, %arg2: i32, %arg3: memref<2x72xf32, #tpu.memory_space<smem>>, %arg4: memref<2x1xi32, #tpu.memory_space<smem>>, %arg5: memref<2x8xi32, #tpu.memory_space<smem>>, %arg6: memref<2x192xf32, #tpu.memory_space<smem>>) -> (i32, i32, i32) {
    %c0_i32 = arith.constant 0 : i32
    return %arg0, %arg1, %arg2 : i32, i32, i32
  }
}

</mosaic_0001>

<bundles_post_ra>
// kernel: tpu_custom_call.1
= control target key start
LH: loop header
LB: loop body
LE: loop exit
PB: predicated region body
PF: predicated region fallthrough
CT: control target
= control target key end

     0   :  { %s2691_s0 = inlined_call_operand.vmem [shape: f32[2,72], index: 0, kind: input, shape index: {}]   ;;  %s2692_s4 = inlined_call_operand.hbm [shape: f32[2,3,16,128], index: 4, kind: output, shape index: {0}]   ;;  %s2693_s5 = inlined_call_operand.hbm [shape: f32[2,16,128], index: 5, kind: output, shape index: {1}]   ;;  %s2694_s6 = inlined_call_operand.hbm [shape: f32[2,16,128], index: 6, kind: output, shape index: {2}]   ;;  %s2695_s1 = inlined_call_operand.vmem [shape: s32[2,1], index: 1, kind: input, shape index: {}]   ;;  %s2696_s2 = inlined_call_operand.vmem [shape: s32[2,8], index: 2, kind: input, shape index: {}]   ;;  %s2697_s3 = inlined_call_operand.vmem [shape: f32[2,192], index: 3, kind: input, shape index: {}]  }
   0x1   :  { %2732 = sst [smem:[#allocation39_spill]] %s2692_s4  ;;  %s12_s23 = sshll.u32 %s2691_s0, 4  ;;  %s13_s23 = int_to_ptr.vmem [resolvable:$true] %s12_s23 }
   0x2   :  { %2733 = sst [smem:[#allocation40_spill]] %s2693_s5  ;;  %s16_s26 = sshll.u32 %s2695_s1, 4  ;;  %s17_s26 = int_to_ptr.vmem [resolvable:$true] %s16_s26 }
   0x3   :  { %2734 = sst [smem:[#allocation41_spill]] %s2694_s6  ;;  %s1567_s27 = scalar_lea.vmem %s13_s23, 32 }
   0x4   :  { %p1568_p0 = scmp.ne.s32.totalorder %s13_s23, %s1567_s27  ;;  %p1572_p1 = scmp.lt.s32.totalorder %s13_s23, %s13_s23 }
   0x5   :  { %p1573_p2 = scmp.lt.s32.totalorder %s1567_s27, %s1567_s27 }
   0x7   :  { %p1574_p3 = por %p1573_p2, %p1572_p1 }
   0x9   :  { %p1575_p4 = pnand %p1574_p3, %p1568_p0 }
   0xb   :  { %1578 = shalt.err (!%p1575_p4)  }
   0xc   :  { %s1757_s28 = smov [#allocation4]   ;;  %s1579_s29 = scalar_lea.vmem %s17_s26, 32 }
   0xd   :  { %15 = dma.vmem_to_smem %s13_s23, 32, %s1757_s28, [#allocation3] }
   0xe   :  { %p1580_p5 = scmp.ne.s32.totalorder %s17_s26, %s1579_s29  ;;  %p1584_p6 = scmp.lt.s32.totalorder %s17_s26, %s17_s26 }
   0xf   :  { %p1585_p7 = scmp.lt.s32.totalorder %s1579_s29, %s1579_s29 }
  0x11   :  { %p1586_p8 = por %p1585_p7, %p1584_p6 }
  0x13   :  { %p1587_p9 = pnand %p1586_p8, %p1580_p5 }
  0x15   :  { %1590 = shalt.err (!%p1587_p9)  }
  0x16   :  { %s1758_s0 = smov [#allocation5]   ;;  %s20_s7 = sshll.u32 %s2696_s2, 4  ;;  %s21_s7 = int_to_ptr.vmem [resolvable:$true] %s20_s7 }
  0x17   :  { %19 = dma.vmem_to_smem %s17_s26, 32, %s1758_s0, [#allocation3] }
  0x18   :  { %s24_s10 = sshll.u32 %s2697_s3, 4  ;;  %s1591_s11 = scalar_lea.vmem %s21_s7, 32  ;;  %s25_s10 = int_to_ptr.vmem [resolvable:$true] %s24_s10 }
  0x19   :  { %p1592_p10 = scmp.ne.s32.totalorder %s21_s7, %s1591_s11  ;;  %p1596_p11 = scmp.lt.s32.totalorder %s21_s7, %s21_s7 }
  0x1a   :  { %p1597_p12 = scmp.lt.s32.totalorder %s1591_s11, %s1591_s11 }
  0x1c   :  { %p1598_p13 = por %p1597_p12, %p1596_p11 }
  0x1e   :  { %p1599_p0 = pnand %p1598_p13, %p1592_p10 }
  0x20   :  { %1602 = shalt.err (!%p1599_p0)  }
  0x21   :  { %s1759_s12 = smov [#allocation6]   ;;  %s1603_s13 = scalar_lea.vmem %s25_s10, 64 }
  0x22   :  { %23 = dma.vmem_to_smem %s21_s7, 32, %s1759_s12, [#allocation3] }
  0x23   :  { %p1604_p1 = scmp.ne.s32.totalorder %s25_s10, %s1603_s13  ;;  %p1608_p2 = scmp.lt.s32.totalorder %s25_s10, %s25_s10 }
  0x24   :  { %p1609_p3 = scmp.lt.s32.totalorder %s1603_s13, %s1603_s13 }
  0x26   :  { %p1610_p4 = por %p1609_p3, %p1608_p2 }
  0x28   :  { %p1611_p5 = pnand %p1610_p4, %p1604_p1 }
  0x2a   :  { %1614 = shalt.err (!%p1611_p5)  }
  0x2b   :  { %s1760_s2 = smov [#allocation7]  }
  0x2c   :  { %27 = dma.vmem_to_smem %s25_s10, 64, %s1760_s2, [#allocation3] }
  0x2d   :  { %1723 = dma.done.wait [#allocation3], 160 }
  0x2e   :  { %1724 = vsyncadd [#allocation3], 4294967136 }
  0x2f   :  { %29 = sfence }
  0x30   :  { %30 = vsyncpa [#allocation9], 0 }
  0x31   :  { %32 = vsyncpa [#allocation9 + $0x1], 0 }
  0x32   :  { %33 = vsyncpa [#allocation11], 0 }
  0x33   :  { %35 = vsyncpa [#allocation11 + $0x1], 0  ;;  %s1820_s3 = smov 0   ;;  %s1822_s14 = smov 0  }
  0x34   :  { %s1824_s15 = smov 0   ;;  %s1826_s16 = smov 0  }
  0x35 LB: > { %2735 = sst [smem:[#allocation16_spill]] %s1735_s3  ;;  %s56_s17 = sadd.s32 1, %s1743_s15  ;;  %s1747_s16 = sphi %s1826_s16, %s41_s16   ;;  %s1743_s15 = sphi %s1824_s15, %s2799_s15   ;;  %s1739_s14 = sphi %s1822_s14, %s2798_s14   ;;  %s1735_s3 = sphi %s1820_s3, %s2797_s3  }
  0x36   : > { %2736 = sst [smem:[#allocation17_spill]] %s1739_s14  ;;  %s2698_s18 = sadd.s32 4294967295, %s1747_s16  }
  0x37   : > { %2737 = sst [smem:[#allocation18_spill]] %s1743_s15  ;;  %p58_p6 = scmp.ge.s32.totalorder %s56_s17, 2 }
  0x38   : > { %2738 = sst [smem:[#allocation19_spill]] %s1747_s16  ;;  %p76_p7 = scmp.ne.s32.totalorder %s1739_s14, %s1735_s3 }
  0x39   : > { %s2801_s17 = smov (%p58_p6, %s56_s17), 0  ;;  %s67_s19 = sadd.s32 1, %s1739_s14 }
  0x3a   : > { %2739 = sst [smem:[#allocation20_spill]] %s2801_s17  ;;  %p77_p8 = scmp.eq.s32.totalorder %s2698_s18, 1 }
  0x3b   : > { %s60_s20 = ssub.s32 %s1743_s15, %s2801_s17  ;;  %p71_p9 = scmp.eq.s32.totalorder %s1747_s16, 1 }
  0x3c   : > { %p65_p10 = scmp.eq.s32.totalorder %s60_s20, 0  ;;  %p1358_p11 = scmp.ne.s32.totalorder %s60_s20, 0 }
  0x3d   : > { %p1852_p12 = por %p77_p8, %p76_p7  ;;  %p1361_p0 = scmp.ge.s32.totalorder %s1747_s16, 2 }
  0x3e   : > { %s1857_s22 = scalar_select %p65_p10, %s1739_s14, %s67_s19  }
  0x3f   : > { %s2740_s21 = scalar_select %p1852_p12, 1, 0 }
  0x40   : > { %2742 = sst [smem:[#allocation22_spill]] %s1857_s22  ;;  %p1859_p13 = por %p1358_p11, %p71_p9 }
  0x41   : > { %2741 = sst [smem:[#allocation21_spill]] %s2740_s21  ;;  %132 = sbr.rel (%p1361_p0) target bundleno = 792 (0x318), region = 12 }
  0x42   : > { %s2743_s23 = scalar_select %p1859_p13, 1, 0 }
  0x44   : > { %2744 = sst [smem:[#allocation23_spill]] %s2743_s23 }
  0x48   : > { %s1865_s24 = sand.u32 1, %s1739_s14   ;;  %s1364_s25 = sshll.u32 %s1743_s15, 7  ;;  %v168_v0 = vlaneseq  ;;  %v1761_v1 = vmov 4294967295   ;;  %v1762_v4 = vmov 100.0  }
  0x49   : > { %2745 = sst [smem:[#allocation24_spill]] %s1865_s24  ;;  %s1441_s26 = smul.u32 48, %s1865_s24  ;;  %196 = vst [vmem:[#allocation2] sm:$0xff] %v1761_v1  ;;  %197 = vst [vmem:[#allocation2 + $0x8] sm:$0xff] %v1761_v1 }
  0x4a   : > { %s1362_s27 = sshll.u32 %s1865_s24, 4  ;;  %v169_v2 = vshrl.u32 %v168_v0, 7  ;;  %v178_v3 = vand.u32 127, %v168_v0  ;;  %s1870_s28 = sld [smem:[#allocation5 + %s1364_s25]] }
  0x4b   : > { %s1872_s29 = scalar_lea.vmem [#allocation12], %s1362_s27  ;;  %s1882_s0 = scalar_lea.vmem [#allocation8], %s1441_s26 }
  0x4c   : > { %2747 = sst [smem:[#allocation26_spill]] %s1872_s29  ;;  %194 = vst [vmem:[%s1872_s29] sm:$0xff] %v1762_v4  ;;  %195 = vst [vmem:[%s1872_s29 + $0x8] sm:$0xff] %v1762_v4  ;;  %v170_v5 = vadd.s32 8, %v169_v2  ;;  %v174_v6 = vcvt.s32.f32 %v169_v2  ;;  %v181_v7 = vcvt.s32.f32 %v178_v3  ;;  %s1884_s1 = scalar_lea.vmem [#allocation10], %s1362_s27 }
  0x4d   : > { %2748 = sst [smem:[#allocation27_spill]] %s1882_s0 }
  0x4e   : > { %v175_v8 = vcvt.s32.f32 %v170_v5  ;;  %v182_v9 = vmul.f32 2.0, %v174_v6  ;;  %v190_v10 = vmul.f32 2.0, %v181_v7  ;;  %2749 = sst [smem:[#allocation28_spill]] %s1884_s1 }
  0x50   : > { %2746 = sst [smem:[#allocation25_spill]] %s1870_s28  ;;  %v183_v11 = vmul.f32 2.0, %v175_v8  ;;  %v184_v12 = vadd.f32 1.0, %v182_v9  ;;  %v191_v13 = vadd.f32 1.0, %v190_v10  ;;  %p1368_p1 = scmp.le.s32.totalorder %s1870_s28, 0 }
  0x51   : > { %s1889_s30 = smov (!%p1368_p1), 0  }
  0x52   : > { %v185_v14 = vadd.f32 1.0, %v183_v11  ;;  %v1365_v15 = vadd.f32 -16.0, %v184_v12  ;;  %v1367_v16 = vadd.f32 -16.0, %v191_v13  ;;  %1323 = sbr.rel (%p1368_p1) target bundleno = 249 (0xf9), region = 90 }
  0x54   : > { %v1366_v17 = vadd.f32 -16.0, %v185_v14  ;;  %v1876_v18 = vmul.f32 0.0625, %v1365_v15  ;;  %v1878_v19 = vmul.f32 0.0625, %v1367_v16 }
  0x56   : > { %v1880_v20 = vmul.f32 0.0625, %v1366_v17 }
  0x59 LB: >> { %s204_s7 = sshra.s32 %s1751_s30, 7  ;;  %s209_s8 = sand.u32 127, %s1751_s30  ;;  %s1751_s30 = sphi %s1889_s30, %s201_s30  }
  0x5a   : >> { %s206_s9 = sadd.s32 %s1743_s15, %s204_s7  ;;  %s201_s30 = sadd.s32 1, %s1751_s30  }
  0x5b   : >> { %s1369_s10 = sshll.u32 %s206_s9, 7  ;;  %p200_p2 = scmp.ge.s32.totalorder %s201_s30, %s1870_s28 }
  0x5c   : >> { %s210_s11 = sadd.s32 %s1369_s10, %s209_s8 }
  0x5d   : >> { %s1897_s12 = sld [smem:[#allocation6 + %s210_s11]] }
  0x63   : >> { %s1900_s13 = smul.u32 9, %s1897_s12 }
  0x65   : >> { %s213_s2 = sshra.s32 %s1900_s13, 7  ;;  %s218_s19 = sand.u32 127, %s1900_s13 }
  0x66   : >> { %s215_s20 = sadd.s32 %s1743_s15, %s213_s2  ;;  %s221_s25 = sadd.s32 1, %s1900_s13 }
  0x67   : >> { %s1370_s26 = sshll.u32 %s215_s20, 7  ;;  %s222_s27 = sshra.s32 %s221_s25, 7 }
  0x68   : >> { %s219_s7 = sadd.s32 %s1370_s26, %s218_s19  ;;  %s224_s8 = sadd.s32 %s1743_s15, %s222_s27 }
  0x69   : >> { %s1907_s9 = sld [smem:[#allocation4 + %s219_s7]]  ;;  %s1371_s10 = sshll.u32 %s224_s8, 7 }
  0x6a   : >> { %s227_s11 = sand.u32 127, %s221_s25  ;;  %s239_s18 = sadd.s32 3, %s1900_s13 }
  0x6b   : >> { %s228_s17 = sadd.s32 %s1371_s10, %s227_s11  ;;  %s240_s22 = sshra.s32 %s239_s18, 7 }
  0x6c   : >> { %s1910_s14 = sld [smem:[#allocation4 + %s228_s17]]  ;;  %s242_s21 = sadd.s32 %s1743_s15, %s240_s22 }
  0x6d   : >> { %s1373_s2 = sshll.u32 %s242_s21, 7  ;;  %s245_s3 = sand.u32 127, %s239_s18 }
  0x6e   : >> { %s246_s20 = sadd.s32 %s1373_s2, %s245_s3  ;;  %s248_s4 = sadd.s32 4, %s1900_s13 }
  0x6f   : >> { %s1914_s19 = sld [smem:[#allocation4 + %s246_s20]]  ;;  %s249_s26 = sshra.s32 %s248_s4, 7 }
  0x70   : >> { %s251_s27 = sadd.s32 %s1743_s15, %s249_s26  ;;  %s254_s7 = sand.u32 127, %s248_s4 }
  0x71   : >> { %s1374_s25 = sshll.u32 %s251_s27, 7  ;;  %s266_s8 = sadd.s32 6, %s1900_s13 }
  0x72   : >> { %s255_s10 = sadd.s32 %s1374_s25, %s254_s7  ;;  %s267_s17 = sshra.s32 %s266_s8, 7 }
  0x73   : >> { %s1918_s11 = sld [smem:[#allocation4 + %s255_s10]]  ;;  %s269_s18 = sadd.s32 %s1743_s15, %s267_s17 }
  0x74   : >> { %s1376_s3 = sshll.u32 %s269_s18, 7  ;;  %s272_s21 = sand.u32 127, %s266_s8 }
  0x75   : >> { %s273_s22 = sadd.s32 %s1376_s3, %s272_s21  ;;  %s275_s2 = sadd.s32 7, %s1900_s13 }
  0x76   : >> { %s1922_s20 = sld [smem:[#allocation4 + %s273_s22]]  ;;  %s276_s4 = sshra.s32 %s275_s2, 7 }
  0x77   : >> { %s278_s26 = sadd.s32 %s1743_s15, %s276_s4  ;;  %s281_s27 = sand.u32 127, %s275_s2 }
  0x78   : >> { %s1377_s7 = sshll.u32 %s278_s26, 7  ;;  %s343_s25 = ssub.f32 %s1914_s19, %s1907_s9 }
  0x79   : >> { %s282_s10 = sadd.s32 %s1377_s7, %s281_s27  ;;  %s1929_s6 = ssub.f32 %s1910_s14, %s1918_s11 }
  0x7a   : >> { %s1931_s8 = sld [smem:[#allocation4 + %s282_s10]]  ;;  %v344_v21 = vstv %s343_s25  ;;  %s230_s17 = sadd.s32 2, %s1900_s13 }
  0x7b   : >> { %v341_v22 = vstv %s1929_s6  ;;  %v345_v23 = vmul.f32 %v344_v21, %v1876_v18  ;;  %v346_v24 = vmul.f32 %v344_v21, %v1880_v20  ;;  %s231_s18 = sshra.s32 %s230_s17, 7  ;;  %s236_s3 = sand.u32 127, %s230_s17 }
  0x7c   : >> { %s294_s21 = smul.f32 %s1929_s6, %s1922_s20  ;;  %s329_s22 = ssub.f32 %s1907_s9, %s1922_s20  ;;  %v342_v25 = vmul.f32 %v341_v22, %v1878_v19 }
  0x7d   : >> { %s233_s2 = sadd.s32 %s1743_s15, %s231_s18  ;;  %s257_s4 = sadd.s32 5, %s1900_s13 }
  0x7e   : >> { %v347_v26 = vadd.f32 %v345_v23, %v342_v25  ;;  %v348_v27 = vadd.f32 %v346_v24, %v342_v25  ;;  %s1372_s26 = sshll.u32 %s233_s2, 7  ;;  %s258_s27 = sshra.s32 %s257_s4, 7  ;;  %v330_v28 = vstv %s329_s22 }
  0x7f   : >> { %s237_s7 = sadd.s32 %s1372_s26, %s236_s3  ;;  %s260_s25 = sadd.s32 %s1743_s15, %s258_s27  ;;  %v331_v29 = vmul.f32 %v330_v28, %v1876_v18  ;;  %v332_v30 = vmul.f32 %v330_v28, %v1880_v20 }
  0x80   : >> { %s1947_s10 = ssub.f32 %s1918_s11, %s1931_s8  ;;  %s238_s6 = sld [smem:[#allocation4 + %s237_s7]] }
  0x81   : >> { %s298_s17 = ssub.f32 %s1931_s8, %s1910_s14  ;;  %s1375_s24 = sshll.u32 %s260_s25, 7 }
  0x82   : >> { %s296_s5 = smul.f32 %s1947_s10, %s1907_s9  ;;  %s263_s18 = sand.u32 127, %s257_s4  ;;  %v313_v37 = vstv %s1947_s10 }
  0x83   : >> { %s299_s2 = smul.f32 %s298_s17, %s1914_s19  ;;  %v327_v31 = vstv %s298_s17  ;;  %s264_s3 = sadd.s32 %s1375_s24, %s263_s18  ;;  %v314_v39 = vmul.f32 %v313_v37, %v1878_v19 }
  0x84   : >> { %s297_s22 = sadd.f32 %s296_s5, %s294_s21  ;;  %v328_v32 = vmul.f32 %v327_v31, %v1878_v19  ;;  %s265_s26 = sld [smem:[#allocation4 + %s264_s3]] }
  0x85   : >> { %s284_s27 = sadd.s32 8, %s1900_s13  ;;  %s335_s7 = smul.f32 %s1922_s20, %s1910_s14 }
  0x86   : >> { %s300_s25 = sadd.f32 %s299_s2, %s297_s22  ;;  %v333_v33 = vadd.f32 %v331_v29, %v328_v32  ;;  %v334_v34 = vadd.f32 %v332_v30, %v328_v32  ;;  %v304_v35 = vstv %s238_s6  ;;  %s285_s4 = sshra.s32 %s284_s27, 7 }
  0x87   : >> { %s287_s24 = sadd.s32 %s1743_s15, %s285_s4  ;;  %s290_s17 = sand.u32 127, %s284_s27  ;;  %1539 = vrcp.f32 %v304_v35 }
  0x88   : >> { %v301_v36 = vstv %s300_s25  ;;  %s1378_s5 = sshll.u32 %s287_s24, 7  ;;  %s336_s13 = smul.f32 %s1931_s8, %s1907_s9 }
  0x89   : >> { %1541 = vrcp.f32 %v301_v36  ;;  %s291_s21 = sadd.s32 %s1378_s5, %s290_s17  ;;  %s349_s18 = smul.f32 %s1918_s11, %s1907_s9 }
  0x8a   : >> { %v307_v38 = vstv %s265_s26  ;;  %s292_s6 = sld [smem:[#allocation4 + %s291_s21]]  ;;  %s337_s2 = ssub.f32 %s335_s7, %s336_s13 }
  0x8b   : >> { %1543 = vrcp.f32 %v307_v38  ;;  %s350_s3 = smul.f32 %s1914_s19, %s1910_s14  ;;  %s315_s22 = ssub.f32 %s1922_s20, %s1914_s19 }
  0x8c   : >> { %v338_v40 = vstv %s337_s2  ;;  %s321_s27 = smul.f32 %s1931_s8, %s1914_s19 }
  0x8d   : >> { %v339_v41 = vadd.f32 %v338_v40, %v333_v33  ;;  %v340_v42 = vadd.f32 %v338_v40, %v334_v34  ;;  %s351_s25 = ssub.f32 %s349_s18, %s350_s3  ;;  %v316_v43 = vstv %s315_s22  ;;  %s322_s4 = smul.f32 %s1922_s20, %s1918_s11 }
  0x8e   : >> { %v317_v44 = vmul.f32 %v316_v43, %v1876_v18  ;;  %v318_v45 = vmul.f32 %v316_v43, %v1880_v20 }
  0x8f   : >> { %v352_v46 = vstv %s351_s25  ;;  %s323_s9 = ssub.f32 %s321_s27, %s322_s4  ;;  %vm357_vm0 = vcmp.ge.f32.partialorder %v339_v41, 0.0  ;;  %vm358_vm1 = vcmp.ge.f32.partialorder %v340_v42, 0.0 }
  0x90   : >> { %v310_v47 = vstv %s292_s6  ;;  %v353_v48 = vadd.f32 %v352_v46, %v347_v26  ;;  %v354_v49 = vadd.f32 %v352_v46, %v348_v27  ;;  %v319_v50 = vadd.f32 %v317_v44, %v314_v39  ;;  %v415_v46 = vld [vmem:[%s1872_s29] sm:$0xff] }
  0x91   : >> { %1545 = vrcp.f32 %v310_v47  ;;  %v320_v51 = vadd.f32 %v318_v45, %v314_v39  ;;  %v324_v52 = vstv %s323_s9  ;;  %v1540_v53 = vpop.eup %1539  ;;  %v416_v47 = vld [vmem:[%s1872_s29 + $0x8] sm:$0xff] }
  0x92   : >> { %v325_v54 = vadd.f32 %v324_v52, %v319_v50  ;;  %vm361_vm3 = vcmp.ge.f32.partialorder %v353_v48, 0.0  ;;  %vm362_vm6 = vcmp.ge.f32.partialorder %v354_v49, 0.0  ;;  %v434_v50 = vld [vmem:[#allocation2 + $0x8] sm:$0xff] }
  0x93   : >> { %v1542_v55 = vpop.eup %1541  ;;  %v326_v56 = vadd.f32 %v324_v52, %v320_v51 }
  0x94   : >> { %1442 = vpush %v1542_v55  ;;  %vm355_vm2 = vcmp.ge.f32.partialorder %v325_v54, 0.0 }
  0x95   : >> { %v1544_v57 = vpop.eup %1543  ;;  %1444 = vpush %v1540_v53  ;;  %vm356_vm4 = vcmp.ge.f32.partialorder %v326_v56, 0.0  ;;  %vm359_vm5 = vmand %vm355_vm2, %vm357_vm0 }
  0x96   : >> { %1446 = vpush %v1544_v57  ;;  %vm360_vm7 = vmand %vm356_vm4, %vm358_vm1 }
  0x97   : >> { %vm1977_vm8 = vmand %vm359_vm5, %vm361_vm3 }
  0x98   : >> { %vm1981_vm9 = vmand %vm360_vm7, %vm362_vm6 }
  0x9b   : >> { %v1546_v60 = vpop.eup %1545 }
  0x9c   : >> { %1448 = vpush %v1546_v60 }
  0xc5   : >> { %s1443_s14 = spop %1442 }
  0xc6   : >> { %v365_v61 = vstv %s1443_s14  ;;  %s1445_s19 = spop %1444 }
  0xc7   : >> { %v372_v62 = vmul.f32 %v365_v61, %v339_v41  ;;  %v373_v63 = vmul.f32 %v365_v61, %v340_v42  ;;  %v378_v0 = vmul.f32 %v365_v61, %v353_v48  ;;  %v379_v1 = vmul.f32 %v365_v61, %v354_v49  ;;  %s1447_s11 = spop %1446  ;;  %v433_v48 = vld [vmem:[#allocation2] sm:$0xff] }
  0xc8   : >> { %v366_v2 = vmul.f32 %v365_v61, %v325_v54  ;;  %v367_v3 = vmul.f32 %v365_v61, %v326_v56  ;;  %v398_v24 = vstv %s1445_s19  ;;  %v401_v25 = vstv %s1447_s11 }
  0xc9   : >> { %v374_v4 = vmax.f32 %v372_v62, 0.0  ;;  %v375_v5 = vmax.f32 %v373_v63, 0.0  ;;  %v380_v6 = vmax.f32 %v378_v0, 0.0  ;;  %v381_v7 = vmax.f32 %v379_v1, 0.0 }
  0xca   : >> { %v368_v8 = vmax.f32 %v366_v2, 0.0  ;;  %v369_v9 = vmax.f32 %v367_v3, 0.0  ;;  %v435_v49 = vstv %s1897_s12 }
  0xcb   : >> { %v376_v10 = vmin.f32 %v374_v4, 1.0  ;;  %v377_v11 = vmin.f32 %v375_v5, 1.0  ;;  %v382_v14 = vmin.f32 %v380_v6, 1.0  ;;  %v383_v15 = vmin.f32 %v381_v7, 1.0 }
  0xcc   : >> { %v370_v12 = vmin.f32 %v368_v8, 1.0  ;;  %v371_v13 = vmin.f32 %v369_v9, 1.0 }
  0xcd   : >> { %s1449_s20 = spop %1448 }
  0xce   : >> { %v384_v16 = vadd.f32 %v376_v10, %v370_v12  ;;  %v385_v17 = vadd.f32 %v377_v11, %v371_v13  ;;  %v406_v33 = vstv %s1449_s20 }
  0xd0   : >> { %v386_v21 = vadd.f32 %v384_v16, %v382_v14  ;;  %v387_v22 = vadd.f32 %v385_v17, %v383_v15 }
  0xd2   : >> { %1547 = vrcp.f32 %v386_v21 }
  0xd3   : >> { %1549 = vrcp.f32 %v387_v22 }
  0xdc   : >> { %v1548_v23 = vpop.eup %1547 }
  0xdd   : >> { %v1550_v26 = vpop.eup %1549  ;;  %v392_v27 = vmul.f32 %v1548_v23, %v370_v12  ;;  %v394_v28 = vmul.f32 %v1548_v23, %v376_v10  ;;  %v396_v29 = vmul.f32 %v1548_v23, %v382_v14 }
  0xde   : >> { %v393_v30 = vmul.f32 %v1550_v26, %v371_v13  ;;  %v395_v31 = vmul.f32 %v1550_v26, %v377_v11  ;;  %v397_v32 = vmul.f32 %v1550_v26, %v383_v15 }
  0xdf   : >> { %v399_v34 = vmul.f32 %v398_v24, %v392_v27  ;;  %v402_v35 = vmul.f32 %v401_v25, %v394_v28  ;;  %v407_v39 = vmul.f32 %v406_v33, %v396_v29 }
  0xe0   : >> { %v400_v36 = vmul.f32 %v398_v24, %v393_v30  ;;  %v403_v37 = vmul.f32 %v401_v25, %v395_v31  ;;  %v408_v41 = vmul.f32 %v406_v33, %v397_v32 }
  0xe1   : >> { %v404_v38 = vadd.f32 %v402_v35, %v399_v34 }
  0xe2   : >> { %v405_v40 = vadd.f32 %v403_v37, %v400_v36 }
  0xe3   : >> { %v409_v42 = vadd.f32 %v407_v39, %v404_v38 }
  0xe4   : >> { %v410_v43 = vadd.f32 %v408_v41, %v405_v40 }
  0xe5   : >> { %1551 = vrcp.f32 %v409_v42 }
  0xe6   : >> { %1553 = vrcp.f32 %v410_v43 }
  0xef   : >> { %v1552_v44 = vpop.eup %1551 }
  0xf0   : >> { %v1554_v45 = vpop.eup %1553  ;;  %vm417_vm10 = vcmp.gt.f32.partialorder %v1552_v44, 0.1  ;;  %vm421_vm11 = vcmp.lt.f32.partialorder %v1552_v44, 100.0  ;;  %vm425_vm2 = vcmp.lt.f32.partialorder %v1552_v44, %v415_v46 }
  0xf1   : >> { %vm418_vm12 = vcmp.gt.f32.partialorder %v1554_v45, 0.1  ;;  %vm419_vm13 = vmand %vm1977_vm8, %vm417_vm10  ;;  %vm422_vm14 = vcmp.lt.f32.partialorder %v1554_v45, 100.0  ;;  %vm426_vm3 = vcmp.lt.f32.partialorder %v1554_v45, %v416_v47 }
  0xf2   : >> { %vm420_vm15 = vmand %vm1981_vm9, %vm418_vm12  ;;  %203 = sbr.rel (!%p200_p2) target bundleno = 89 (0x59), region = 96 }
  0xf3   : >> { %vm423_vm0 = vmand %vm419_vm13, %vm421_vm11 }
  0xf4   : >> { %vm424_vm1 = vmand %vm420_vm15, %vm422_vm14 }
  0xf5   : >> { %vm427_vm4 = vmand %vm423_vm0, %vm425_vm2 }
  0xf6   : >> { %vm428_vm5 = vmand %vm424_vm1, %vm426_vm3  ;;  %v429_v51 = vsel %vm427_vm4, %v1552_v44, %v415_v46  ;;  %v436_v52 = vsel %vm427_vm4, %v435_v49, %v433_v48 }
  0xf7   : >> { %v430_v53 = vsel %vm428_vm5, %v1554_v45, %v416_v47  ;;  %431 = vst [vmem:[%s1872_s29] sm:$0xff] %v429_v51  ;;  %v437_v54 = vsel %vm428_vm5, %v435_v49, %v434_v50  ;;  %438 = vst [vmem:[#allocation2] sm:$0xff] %v436_v52 }
  0xf8   : >> { %432 = vst [vmem:[%s1872_s29 + $0x8] sm:$0xff] %v430_v53  ;;  %439 = vst [vmem:[#allocation2 + $0x8] sm:$0xff] %v437_v54 }
  0xf9 PF: > { %v1763_v57 = vmov 0.1   ;;  %v1764_v58 = vmov 0.0   ;;  %v1765_v61 = vmov 0.2  }
  0xfa   : > { %450 = vst [vmem:[%s1882_s0] sm:$0xff] %v1763_v57  ;;  %451 = vst [vmem:[%s1882_s0 + $0x8] sm:$0xff] %v1763_v57  ;;  %v1766_v62 = vmov 0.3  }
  0xfb   : > { %1381 = vst [vmem:[%s1882_s0 + $0x10] sm:$0xff] %v1765_v61  ;;  %1382 = vst [vmem:[%s1882_s0 + $0x18] sm:$0xff] %v1765_v61 }
  0xfc   : > { %1383 = vst [vmem:[%s1882_s0 + $0x20] sm:$0xff] %v1766_v62  ;;  %1384 = vst [vmem:[%s1882_s0 + $0x28] sm:$0xff] %v1766_v62  ;;  %1328 = sbr.rel (%p1368_p1) target bundleno = 710 (0x2c6), region = 101 }
  0xfe   : > { %v440_v55 = vld [vmem:[#allocation2] sm:$0xff] }
  0xff   : > { %v441_v56 = vld [vmem:[#allocation2 + $0x8] sm:$0xff]  ;;  %vm442_vm6 = vcmp.ge.s32.totalorder %v440_v55, 0 }
 0x100   : > { %vm443_vm7 = vcmp.ge.s32.totalorder %v441_v56, 0  ;;  %v1379_v59 = vsel %vm442_vm6, 1.0, %v1764_v58 }
 0x101   : > { %v1380_v60 = vsel %vm443_vm7, 1.0, %v1764_v58  ;;  %448 = vst [vmem:[%s1884_s1] sm:$0xff] %v1379_v59 }
 0x102   : > { %449 = vst [vmem:[%s1884_s1 + $0x8] sm:$0xff] %v1380_v60 }
 0x103   : > { %s2008_s30 = smov 0  }
 0x104 LB: >> { %s2754_s29 = sld [smem:[#allocation26_spill]]  ;;  %s2755_s15 = sld [smem:[#allocation18_spill]]  ;;  %v472_v63 = vld [vmem:[#allocation2] sm:$0xff]  ;;  %v473_v0 = vld [vmem:[#allocation2 + $0x8] sm:$0xff]  ;;  %v1767_v4 = vmov 0.0   ;;  %s1755_s30 = sphi %s2008_s30, %s461_s30  }
 0x105   : >> { %2756 = sst [smem:[#allocation29_spill]] %s1755_s30  ;;  %s464_s12 = sshra.s32 %s1755_s30, 7 }
 0x106   : >> { %s469_s8 = sand.u32 127, %s1755_s30 }
 0x10a   : >> { %s466_s10 = sadd.s32 %s2755_s15, %s464_s12 }
 0x10b   : >> { %s1386_s26 = sshll.u32 %s466_s10, 7 }
 0x10c   : >> { %s470_s7 = sadd.s32 %s1386_s26, %s469_s8 }
 0x10d   : >> { %s2016_s24 = sld [smem:[#allocation6 + %s470_s7]] }
 0x113   : >> { %v474_v1 = vstv %s2016_s24 }
 0x114   : >> { %vm2019_vm8 = vcmp.eq.s32.totalorder %v472_v63, %v474_v1  ;;  %vm2023_vm9 = vcmp.eq.s32.totalorder %v473_v0, %v474_v1 }
 0x115   : >> { %v477_v5 = vsel %vm2019_vm8, 1.0, %v1767_v4  ;;  %v478_v6 = vsel %vm2023_vm9, 1.0, %v1767_v4 }
 0x116   : >> { %v479_v7 = vmax.f32 %v477_v5, %v478_v6 }
 0x118   : >> { %480 = vmax.xlane.f32.xlu0 %v479_v7 }
 0x1a5   : >> { %v481_v8 = vpop.xlane.xlu0 %480 }
 0x1a6   : >> { %v482_v9 = vrot.slane %v481_v8, 4 }
 0x1a8   : >> { %v483_v10 = vmax.f32 %v481_v8, %v482_v9 }
 0x1aa   : >> { %v484_v11 = vrot.slane %v483_v10, 2 }
 0x1ac   : >> { %v485_v12 = vmax.f32 %v483_v10, %v484_v11 }
 0x1ae   : >> { %v486_v13 = vrot.slane %v485_v12, 1 }
 0x1b0   : >> { %v487_v14 = vmax.f32 %v485_v12, %v486_v13 }
 0x1b2   : >> { %1450 = vpush %v487_v14 }
 0x1e3   : >> { %s1451_s17 = spop %1450 }
 0x1e4   : >> { %p489_p3 = scmp.gt.f32.partialorder %s1451_s17, 0.0 }
 0x1e6   : >> { %492 = sbr.rel (!%p489_p3) target bundleno = 694 (0x2b6), region = 30 }
 0x1ed   : >> { %s2032_s5 = smul.u32 9, %s2016_s24 }
 0x1ef   : >> { %s494_s13 = sshra.s32 %s2032_s5, 7  ;;  %s499_s21 = sand.u32 127, %s2032_s5 }
 0x1f0   : >> { %s496_s18 = sadd.s32 %s2755_s15, %s494_s13  ;;  %s502_s6 = sadd.s32 1, %s2032_s5 }
 0x1f1   : >> { %s1387_s2 = sshll.u32 %s496_s18, 7  ;;  %s503_s3 = sshra.s32 %s502_s6, 7 }
 0x1f2   : >> { %s500_s22 = sadd.s32 %s1387_s2, %s499_s21  ;;  %s505_s27 = sadd.s32 %s2755_s15, %s503_s3 }
 0x1f3   : >> { %s2039_s25 = sld [smem:[#allocation4 + %s500_s22]]  ;;  %s1388_s4 = sshll.u32 %s505_s27, 7 }
 0x1f4   : >> { %s508_s9 = sand.u32 127, %s502_s6  ;;  %s511_s14 = sadd.s32 2, %s2032_s5 }
 0x1f5   : >> { %s509_s19 = sadd.s32 %s1388_s4, %s508_s9  ;;  %s512_s11 = sshra.s32 %s511_s14, 7 }
 0x1f6   : >> { %s2042_s20 = sld [smem:[#allocation4 + %s509_s19]]  ;;  %s514_s12 = sadd.s32 %s2755_s15, %s512_s11 }
 0x1f7   : >> { %s1389_s8 = sshll.u32 %s514_s12, 7  ;;  %s517_s10 = sand.u32 127, %s511_s14 }
 0x1f8   : >> { %s518_s26 = sadd.s32 %s1389_s8, %s517_s10  ;;  %s520_s7 = sadd.s32 3, %s2032_s5 }
 0x1f9   : >> { %s2046_s17 = sld [smem:[#allocation4 + %s518_s26]]  ;;  %s521_s13 = sshra.s32 %s520_s7, 7 }
 0x1fa   : >> { %s523_s21 = sadd.s32 %s2755_s15, %s521_s13  ;;  %s526_s18 = sand.u32 127, %s520_s7 }
 0x1fb   : >> { %s1390_s6 = sshll.u32 %s523_s21, 7  ;;  %s529_s2 = sadd.s32 4, %s2032_s5 }
 0x1fc   : >> { %s527_s3 = sadd.s32 %s1390_s6, %s526_s18  ;;  %s530_s22 = sshra.s32 %s529_s2, 7 }
 0x1fd   : >> { %s2050_s27 = sld [smem:[#allocation4 + %s527_s3]]  ;;  %s532_s4 = sadd.s32 %s2755_s15, %s530_s22 }
 0x1fe   : >> { %s1391_s9 = sshll.u32 %s532_s4, 7  ;;  %s535_s14 = sand.u32 127, %s529_s2 }
 0x1ff   : >> { %s536_s19 = sadd.s32 %s1391_s9, %s535_s14  ;;  %s538_s11 = sadd.s32 5, %s2032_s5  ;;  %v585_v32 = vstv %s2046_s17 }
 0x200   : >> { %s2054_s12 = sld [smem:[#allocation4 + %s536_s19]]  ;;  %s539_s8 = sshra.s32 %s538_s11, 7  ;;  %1555 = vrcp.f32 %v585_v32 }
 0x201   : >> { %s541_s10 = sadd.s32 %s2755_s15, %s539_s8  ;;  %s544_s26 = sand.u32 127, %s538_s11 }
 0x202   : >> { %s1392_s7 = sshll.u32 %s541_s10, 7  ;;  %s547_s13 = sadd.s32 6, %s2032_s5 }
 0x203   : >> { %s545_s21 = sadd.s32 %s1392_s7, %s544_s26  ;;  %s548_s18 = sshra.s32 %s547_s13, 7 }
 0x204   : >> { %s2058_s6 = sld [smem:[#allocation4 + %s545_s21]]  ;;  %s550_s3 = sadd.s32 %s2755_s15, %s548_s18 }
 0x205   : >> { %s1393_s22 = sshll.u32 %s550_s3, 7  ;;  %s553_s2 = sand.u32 127, %s547_s13 }
 0x206   : >> { %s554_s4 = sadd.s32 %s1393_s22, %s553_s2  ;;  %s556_s9 = sadd.s32 7, %s2032_s5 }
 0x207   : >> { %s2062_s14 = sld [smem:[#allocation4 + %s554_s4]]  ;;  %s557_s19 = sshra.s32 %s556_s9, 7 }
 0x208   : >> { %s559_s11 = sadd.s32 %s2755_s15, %s557_s19  ;;  %s562_s8 = sand.u32 127, %s556_s9 }
 0x209   : >> { %s1394_s10 = sshll.u32 %s559_s11, 7  ;;  %s565_s26 = sadd.s32 8, %s2032_s5 }
 0x20a   : >> { %s563_s7 = sadd.s32 %s1394_s10, %s562_s8  ;;  %s566_s13 = sshra.s32 %s565_s26, 7  ;;  %v588_v36 = vstv %s2058_s6  ;;  %v1556_v52 = vpop.eup %1555 }
 0x20b   : >> { %s2066_s21 = sld [smem:[#allocation4 + %s563_s7]]  ;;  %s568_s18 = sadd.s32 %s2755_s15, %s566_s13  ;;  %1557 = vrcp.f32 %v588_v36 }
 0x20c   : >> { %s1395_s3 = sshll.u32 %s568_s18, 7  ;;  %s571_s22 = sand.u32 127, %s565_s26 }
 0x20d   : >> { %s572_s2 = sadd.s32 %s1395_s3, %s571_s22  ;;  %s2071_s4 = ssub.f32 %s2042_s20, %s2054_s12 }
 0x20e   : >> { %s2073_s5 = sld [smem:[#allocation4 + %s572_s2]]  ;;  %s596_s9 = ssub.f32 %s2062_s14, %s2050_s27 }
 0x20f   : >> { %s575_s19 = smul.f32 %s2071_s4, %s2062_s14  ;;  %s610_s11 = ssub.f32 %s2039_s25, %s2062_s14  ;;  %v622_v15 = vstv %s2071_s4 }
 0x210   : >> { %v597_v16 = vstv %s596_s9  ;;  %s603_s8 = smul.f32 %s2062_s14, %s2054_s12  ;;  %s624_s10 = ssub.f32 %s2050_s27, %s2039_s25  ;;  %v623_v21 = vmul.f32 %v622_v15, %v1878_v19 }
 0x211   : >> { %s576_s7 = ssub.f32 %s2054_s12, %s2066_s21  ;;  %s602_s26 = smul.f32 %s2066_s21, %s2050_s27  ;;  %v611_v17 = vstv %s610_s11  ;;  %v598_v22 = vmul.f32 %v597_v16, %v1876_v18  ;;  %v599_v23 = vmul.f32 %v597_v16, %v1880_v20 }
 0x212   : >> { %s2093_s13 = ssub.f32 %s2066_s21, %s2042_s20  ;;  %v612_v24 = vmul.f32 %v611_v17, %v1876_v18  ;;  %s616_s18 = smul.f32 %s2062_s14, %s2042_s20  ;;  %v625_v25 = vstv %s624_s10  ;;  %v613_v27 = vmul.f32 %v611_v17, %v1880_v20  ;;  %v663_v17 = vld [vmem:[%s2754_s29] sm:$0xff] }
 0x213   : >> { %s577_s3 = smul.f32 %s576_s7, %s2039_s25  ;;  %v594_v26 = vstv %s576_s7  ;;  %s604_s22 = ssub.f32 %s602_s26, %s603_s8  ;;  %v626_v28 = vmul.f32 %v625_v25, %v1876_v18  ;;  %v627_v29 = vmul.f32 %v625_v25, %v1880_v20 }
 0x214   : >> { %s580_s2 = smul.f32 %s2093_s13, %s2050_s27  ;;  %v595_v30 = vmul.f32 %v594_v26, %v1878_v19  ;;  %v608_v31 = vstv %s2093_s13  ;;  %s755_s4 = sshra.s32 %s2755_s15, 1  ;;  %v591_v42 = vstv %s2073_s5 }
 0x215   : >> { %s578_s9 = sadd.f32 %s577_s3, %s575_s19  ;;  %v605_v33 = vstv %s604_s22  ;;  %v609_v34 = vmul.f32 %v608_v31, %v1878_v19  ;;  %s617_s11 = smul.f32 %s2066_s21, %s2039_s25  ;;  %v628_v35 = vadd.f32 %v626_v28, %v623_v21  ;;  %v629_v39 = vadd.f32 %v627_v29, %v623_v21  ;;  %v1558_v53 = vpop.eup %1557 }
 0x216   : >> { %v600_v37 = vadd.f32 %v598_v22, %v595_v30  ;;  %v601_v38 = vadd.f32 %v599_v23, %v595_v30  ;;  %s630_s8 = smul.f32 %s2054_s12, %s2039_s25  ;;  %s2116_s10 = sshll.u32 %s755_s4, 1 }
 0x217   : >> { %s581_s7 = sadd.f32 %s580_s2, %s578_s9  ;;  %v614_v40 = vadd.f32 %v612_v24, %v609_v34  ;;  %v615_v41 = vadd.f32 %v613_v27, %v609_v34  ;;  %s631_s17 = smul.f32 %s2050_s27, %s2042_s20 }
 0x218   : >> { %v2121_v43 = vadd.f32 %v605_v33, %v600_v37  ;;  %v2123_v44 = vadd.f32 %v605_v33, %v601_v38  ;;  %s618_s6 = ssub.f32 %s616_s18, %s617_s11  ;;  %s2129_s21 = smul.u32 24, %s2016_s24 }
 0x219   : >> { %v582_v45 = vstv %s581_s7  ;;  %s632_s25 = ssub.f32 %s630_s8, %s631_s17  ;;  %s761_s12 = sand.u32 1, %s2755_s15 }
 0x21a   : >> { %1559 = vrcp.f32 %v582_v45  ;;  %v619_v46 = vstv %s618_s6  ;;  %s753_s27 = sshra.s32 %s2129_s21, 7  ;;  %s763_s5 = sand.u32 127, %s2129_s21 }
 0x21b   : >> { %1561 = vrcp.f32 %v591_v42  ;;  %v2134_v47 = vadd.f32 %v619_v46, %v614_v40  ;;  %v2136_v48 = vadd.f32 %v619_v46, %v615_v41  ;;  %v633_v49 = vstv %s632_s25  ;;  %s758_s24 = sadd.s32 %s2116_s10, %s753_s27  ;;  %s2139_s20 = sshll.u32 %s761_s12, 7 }
 0x21c   : >> { %v2141_v50 = vadd.f32 %v633_v49, %v628_v35  ;;  %v2143_v51 = vadd.f32 %v633_v49, %v629_v39  ;;  %s1397_s14 = sshll.u32 %s758_s24, 8  ;;  %s765_s19 = sadd.s32 %s2139_s20, %s763_s5  ;;  %v664_v35 = vld [vmem:[%s2754_s29 + $0x8] sm:$0xff] }
 0x21d   : >> { %s766_s26 = sadd.s32 %s1397_s14, %s765_s19  ;;  %s771_s13 = sadd.s32 3, %s2129_s21 }
 0x21e   : >> { %s2147_s18 = sld [smem:[#allocation7 + %s766_s26]]  ;;  %s772_s3 = sshra.s32 %s771_s13, 7 }
 0x21f   : >> { %s774_s22 = sadd.s32 %s2116_s10, %s772_s3  ;;  %s777_s2 = sand.u32 127, %s771_s13 }
 0x220   : >> { %s1399_s4 = sshll.u32 %s774_s22, 8  ;;  %s778_s9 = sadd.s32 %s2139_s20, %s777_s2 }
 0x221   : >> { %s779_s11 = sadd.s32 %s1399_s4, %s778_s9  ;;  %s788_s8 = sadd.s32 6, %s2129_s21 }
 0x222   : >> { %s2152_s7 = sld [smem:[#allocation7 + %s779_s11]]  ;;  %s789_s17 = sshra.s32 %s788_s8, 7 }
 0x223   : >> { %s791_s6 = sadd.s32 %s2116_s10, %s789_s17  ;;  %s794_s25 = sand.u32 127, %s788_s8 }
 0x224   : >> { %v1560_v54 = vpop.eup %1559  ;;  %s1400_s12 = sshll.u32 %s791_s6, 8  ;;  %s795_s27 = sadd.s32 %s2139_s20, %s794_s25  ;;  %v768_v21 = vstv %s2147_s18 }
 0x225   : >> { %v1562_v55 = vpop.eup %1561  ;;  %1452 = vpush %v1560_v54  ;;  %s796_s5 = sadd.s32 %s1400_s12, %s795_s27  ;;  %s801_s24 = sadd.s32 9, %s2129_s21 }
 0x226   : >> { %1454 = vpush %v1556_v52  ;;  %s2157_s14 = sld [smem:[#allocation7 + %s796_s5]]  ;;  %s802_s19 = sshra.s32 %s801_s24, 7 }
 0x227   : >> { %1456 = vpush %v1558_v53  ;;  %s804_s26 = sadd.s32 %s2116_s10, %s802_s19  ;;  %s807_s13 = sand.u32 127, %s801_s24 }
 0x228   : >> { %1458 = vpush %v1562_v55  ;;  %s1401_s3 = sshll.u32 %s804_s26, 8  ;;  %s808_s22 = sadd.s32 %s2139_s20, %s807_s13  ;;  %v781_v22 = vstv %s2152_s7 }
 0x229   : >> { %s809_s2 = sadd.s32 %s1401_s3, %s808_s22  ;;  %s822_s4 = sadd.s32 12, %s2129_s21 }
 0x22a   : >> { %s2162_s9 = sld [smem:[#allocation7 + %s809_s2]]  ;;  %s823_s11 = sshra.s32 %s822_s4, 7 }
 0x22b   : >> { %s825_s8 = sadd.s32 %s2116_s10, %s823_s11  ;;  %s828_s17 = sand.u32 127, %s822_s4 }
 0x22c   : >> { %s1402_s6 = sshll.u32 %s825_s8, 8  ;;  %s829_s25 = sadd.s32 %s2139_s20, %s828_s17  ;;  %v798_v23 = vstv %s2157_s14 }
 0x22d   : >> { %s830_s12 = sadd.s32 %s1402_s6, %s829_s25  ;;  %s835_s27 = sadd.s32 15, %s2129_s21 }
 0x22e   : >> { %s2167_s5 = sld [smem:[#allocation7 + %s830_s12]]  ;;  %s836_s24 = sshra.s32 %s835_s27, 7 }
 0x22f   : >> { %s838_s19 = sadd.s32 %s2116_s10, %s836_s24  ;;  %s841_s26 = sand.u32 127, %s835_s27 }
 0x230   : >> { %s1403_s13 = sshll.u32 %s838_s19, 8  ;;  %s842_s3 = sadd.s32 %s2139_s20, %s841_s26  ;;  %v811_v24 = vstv %s2162_s9 }
 0x231   : >> { %s843_s22 = sadd.s32 %s1403_s13, %s842_s3  ;;  %s852_s2 = sadd.s32 18, %s2129_s21 }
 0x232   : >> { %s2172_s11 = sld [smem:[#allocation7 + %s843_s22]]  ;;  %s853_s4 = sshra.s32 %s852_s2, 7 }
 0x233   : >> { %s855_s8 = sadd.s32 %s2116_s10, %s853_s4  ;;  %s858_s17 = sand.u32 127, %s852_s2 }
 0x234   : >> { %s1404_s6 = sshll.u32 %s855_s8, 8  ;;  %s859_s25 = sadd.s32 %s2139_s20, %s858_s17  ;;  %v832_v25 = vstv %s2167_s5 }
 0x235   : >> { %s860_s12 = sadd.s32 %s1404_s6, %s859_s25  ;;  %s865_s23 = sadd.s32 21, %s2129_s21 }
 0x236   : >> { %s2177_s24 = sld [smem:[#allocation7 + %s860_s12]]  ;;  %s866_s27 = sshra.s32 %s865_s23, 7 }
 0x237   : >> { %s868_s19 = sadd.s32 %s2116_s10, %s866_s27  ;;  %s871_s26 = sand.u32 127, %s865_s23 }
 0x238   : >> { %s1405_s13 = sshll.u32 %s868_s19, 8  ;;  %s872_s3 = sadd.s32 %s2139_s20, %s871_s26  ;;  %v845_v26 = vstv %s2172_s11 }
 0x239   : >> { %s873_s22 = sadd.s32 %s1405_s13, %s872_s3  ;;  %s894_s1 = sadd.s32 1, %s2129_s21 }
 0x23a   : >> { %s2182_s4 = sld [smem:[#allocation7 + %s873_s22]]  ;;  %s895_s2 = sshra.s32 %s894_s1, 7 }
 0x23b   : >> { %s897_s8 = sadd.s32 %s2116_s10, %s895_s2  ;;  %s900_s17 = sand.u32 127, %s894_s1 }
 0x23c   : >> { %s1406_s6 = sshll.u32 %s897_s8, 8  ;;  %s901_s25 = sadd.s32 %s2139_s20, %s900_s17  ;;  %v862_v27 = vstv %s2177_s24 }
 0x23d   : >> { %s902_s12 = sadd.s32 %s1406_s6, %s901_s25  ;;  %s907_s15 = sadd.s32 4, %s2129_s21 }
 0x23e   : >> { %s2187_s27 = sld [smem:[#allocation7 + %s902_s12]]  ;;  %s908_s23 = sshra.s32 %s907_s15, 7 }
 0x23f   : >> { %s910_s19 = sadd.s32 %s2116_s10, %s908_s23  ;;  %s913_s26 = sand.u32 127, %s907_s15 }
 0x240   : >> { %s1407_s13 = sshll.u32 %s910_s19, 8  ;;  %s914_s3 = sadd.s32 %s2139_s20, %s913_s26  ;;  %v875_v28 = vstv %s2182_s4 }
 0x241   : >> { %s915_s22 = sadd.s32 %s1407_s13, %s914_s3  ;;  %s924_s16 = sadd.s32 7, %s2129_s21 }
 0x242   : >> { %s2192_s2 = sld [smem:[#allocation7 + %s915_s22]]  ;;  %s925_s1 = sshra.s32 %s924_s16, 7 }
 0x243   : >> { %s927_s8 = sadd.s32 %s2116_s10, %s925_s1  ;;  %s930_s17 = sand.u32 127, %s924_s16 }
 0x244   : >> { %2761 = sst [smem:[#allocation30_spill]] %s2187_s27  ;;  %s1408_s6 = sshll.u32 %s927_s8, 8 }
 0x245   : >> { %s931_s25 = sadd.s32 %s2139_s20, %s930_s17  ;;  %s937_s28 = sadd.s32 10, %s2129_s21 }
 0x246   : >> { %s932_s12 = sadd.s32 %s1408_s6, %s931_s25  ;;  %s938_s15 = sshra.s32 %s937_s28, 7 }
 0x247   : >> { %s2197_s23 = sld [smem:[#allocation7 + %s932_s12]]  ;;  %s940_s19 = sadd.s32 %s2116_s10, %s938_s15 }
 0x248   : >> { %2762 = sst [smem:[#allocation31_spill]] %s2192_s2  ;;  %s943_s26 = sand.u32 127, %s937_s28 }
 0x249   : >> { %s1409_s13 = sshll.u32 %s940_s19, 8  ;;  %s944_s3 = sadd.s32 %s2139_s20, %s943_s26 }
 0x24a   : >> { %s945_s22 = sadd.s32 %s1409_s13, %s944_s3  ;;  %s958_s30 = sadd.s32 13, %s2129_s21 }
 0x24b   : >> { %s2202_s1 = sld [smem:[#allocation7 + %s945_s22]]  ;;  %s959_s16 = sshra.s32 %s958_s30, 7 }
 0x24c   : >> { %s961_s8 = sadd.s32 %s2116_s10, %s959_s16  ;;  %s964_s17 = sand.u32 127, %s958_s30 }
 0x24d   : >> { %2763 = sst [smem:[#allocation32_spill]] %s2197_s23  ;;  %s1410_s6 = sshll.u32 %s961_s8, 8 }
 0x24e   : >> { %s965_s25 = sadd.s32 %s2139_s20, %s964_s17  ;;  %s971_s0 = sadd.s32 16, %s2129_s21 }
 0x24f   : >> { %s966_s12 = sadd.s32 %s1410_s6, %s965_s25  ;;  %s972_s28 = sshra.s32 %s971_s0, 7 }
 0x250   : >> { %s2207_s15 = sld [smem:[#allocation7 + %s966_s12]]  ;;  %s974_s19 = sadd.s32 %s2116_s10, %s972_s28 }
 0x251   : >> { %2764 = sst [smem:[#allocation33_spill]] %s2202_s1  ;;  %s977_s26 = sand.u32 127, %s971_s0 }
 0x252   : >> { %s1411_s13 = sshll.u32 %s974_s19, 8  ;;  %s978_s3 = sadd.s32 %s2139_s20, %s977_s26 }
 0x253   : >> { %s979_s23 = sadd.s32 %s1411_s13, %s978_s3  ;;  %s988_s22 = sadd.s32 19, %s2129_s21 }
 0x254   : >> { %s2212_s1 = sld [smem:[#allocation7 + %s979_s23]]  ;;  %s989_s16 = sshra.s32 %s988_s22, 7 }
 0x255   : >> { %s991_s2 = sadd.s32 %s2116_s10, %s989_s16  ;;  %s994_s30 = sand.u32 127, %s988_s22 }
 0x256   : >> { %2765 = sst [smem:[#allocation34_spill]] %s2207_s15  ;;  %s1412_s8 = sshll.u32 %s991_s2, 8 }
 0x257   : >> { %s995_s17 = sadd.s32 %s2139_s20, %s994_s30  ;;  %s1001_s25 = sadd.s32 22, %s2129_s21 }
 0x258   : >> { %s996_s6 = sadd.s32 %s1412_s8, %s995_s17  ;;  %s1453_s27 = spop %1452 }
 0x259   : >> { %s2217_s12 = sld [smem:[#allocation7 + %s996_s6]]  ;;  %s2219_s15 = spop %1454  ;;  %v636_v56 = vstv %s1453_s27 }
 0x25a   : >> { %s1002_s0 = sshra.s32 %s1001_s25, 7  ;;  %s2221_s28 = spop %1456  ;;  %v637_v57 = vmul.f32 %v636_v56, %v2121_v43  ;;  %v638_v58 = vmul.f32 %v636_v56, %v2123_v44  ;;  %v643_v59 = vmul.f32 %v636_v56, %v2134_v47  ;;  %v644_v60 = vmul.f32 %v636_v56, %v2136_v48 }
 0x25b   : >> { %s1004_s2 = sadd.s32 %s2116_s10, %s1002_s0  ;;  %s2228_s23 = spop %1458  ;;  %v649_v61 = vmul.f32 %v636_v56, %v2141_v50  ;;  %v650_v62 = vmul.f32 %v636_v56, %v2143_v51  ;;  %v669_v30 = vstv %s2219_s15  ;;  %v698_v38 = vstv %s2221_s28 }
 0x25c   : >> { %s1413_s27 = sshll.u32 %s1004_s2, 8  ;;  %v639_v63 = vmax.f32 %v637_v57, 0.0  ;;  %v640_v0 = vmax.f32 %v638_v58, 0.0  ;;  %v645_v1 = vmax.f32 %v643_v59, 0.0  ;;  %v646_v4 = vmax.f32 %v644_v60, 0.0  ;;  %s1007_s19 = sand.u32 127, %s1001_s25 }
 0x25d   : >> { %s1030_s26 = sadd.s32 2, %s2129_s21  ;;  %v651_v5 = vmax.f32 %v649_v61, 0.0  ;;  %v652_v6 = vmax.f32 %v650_v62, 0.0  ;;  %s1008_s13 = sadd.s32 %s2139_s20, %s1007_s19  ;;  %v727_v43 = vstv %s2228_s23  ;;  %v981_v55 = vstv %s2212_s1 }
 0x25e   : >> { %s1031_s3 = sshra.s32 %s1030_s26, 7  ;;  %v641_v7 = vmin.f32 %v639_v63, 1.0  ;;  %v2234_v8 = vmin.f32 %v640_v0, 1.0  ;;  %v647_v9 = vmin.f32 %v645_v1, 1.0  ;;  %v2236_v10 = vmin.f32 %v646_v4, 1.0  ;;  %s1009_s22 = sadd.s32 %s1413_s27, %s1008_s13 }
 0x25f   : >> { %2766 = sst [smem:[#allocation35_spill]] %s2217_s12  ;;  %s1033_s16 = sadd.s32 %s2116_s10, %s1031_s3  ;;  %v653_v11 = vmin.f32 %v651_v5, 1.0  ;;  %v654_v12 = vmin.f32 %v652_v6, 1.0 }
 0x260   : >> { %s2239_s30 = sld [smem:[#allocation7 + %s1009_s22]]  ;;  %s1418_s8 = sshll.u32 %s1033_s16, 8  ;;  %v655_v13 = vadd.f32 %v647_v9, %v641_v7  ;;  %v656_v14 = vadd.f32 %v2236_v10, %v2234_v8 }
 0x261   : >> { %s1036_s17 = sand.u32 127, %s1030_s26  ;;  %s1043_s6 = sadd.s32 5, %s2129_s21 }
 0x262   : >> { %s1037_s25 = sadd.s32 %s2139_s20, %s1036_s17  ;;  %s1044_s0 = sshra.s32 %s1043_s6, 7  ;;  %v657_v15 = vadd.f32 %v655_v13, %v653_v11  ;;  %v658_v16 = vadd.f32 %v656_v14, %v654_v12 }
 0x263   : >> { %s1038_s2 = sadd.s32 %s1418_s8, %s1037_s25  ;;  %s1046_s27 = sadd.s32 %s2116_s10, %s1044_s0 }
 0x264   : >> { %s2246_s19 = sld [smem:[#allocation7 + %s1038_s2]]  ;;  %s1419_s13 = sshll.u32 %s1046_s27, 8  ;;  %1563 = vrcp.f32 %v657_v15 }
 0x265   : >> { %s1049_s3 = sand.u32 127, %s1043_s6  ;;  %s1060_s22 = sadd.s32 8, %s2129_s21  ;;  %1565 = vrcp.f32 %v658_v16 }
 0x266   : >> { %2767 = sst [smem:[#allocation36_spill]] %s2239_s30  ;;  %s1050_s26 = sadd.s32 %s2139_s20, %s1049_s3 }
 0x267   : >> { %s1061_s16 = sshra.s32 %s1060_s22, 7  ;;  %s1051_s17 = sadd.s32 %s1419_s13, %s1050_s26 }
 0x268   : >> { %s1063_s30 = sadd.s32 %s2116_s10, %s1061_s16  ;;  %s2251_s8 = sld [smem:[#allocation7 + %s1051_s17]] }
 0x269   : >> { %s1420_s25 = sshll.u32 %s1063_s30, 8  ;;  %s1066_s0 = sand.u32 127, %s1060_s22 }
 0x26a   : >> { %2768 = sst [smem:[#allocation37_spill]] %s2246_s19  ;;  %s1073_s2 = sadd.s32 11, %s2129_s21 }
 0x26b   : >> { %s1067_s6 = sadd.s32 %s2139_s20, %s1066_s0  ;;  %s1074_s27 = sshra.s32 %s1073_s2, 7 }
 0x26c   : >> { %s1068_s3 = sadd.s32 %s1420_s25, %s1067_s6  ;;  %s1076_s19 = sadd.s32 %s2116_s10, %s1074_s27 }
 0x26d   : >> { %s2256_s12 = sld [smem:[#allocation7 + %s1068_s3]]  ;;  %s1421_s13 = sshll.u32 %s1076_s19, 8 }
 0x26e   : >> { %s2770_s26 = sld [smem:[#allocation30_spill]]  ;;  %s2771_s16 = sld [smem:[#allocation31_spill]]  ;;  %v1564_v29 = vpop.eup %1563 }
 0x26f   : >> { %s2772_s30 = sld [smem:[#allocation32_spill]]  ;;  %s1079_s22 = sand.u32 127, %s1073_s2  ;;  %v1566_v34 = vpop.eup %1565  ;;  %v665_v36 = vmul.f32 %v1564_v29, %v641_v7  ;;  %v694_v37 = vmul.f32 %v1564_v29, %v647_v9  ;;  %v723_v39 = vmul.f32 %v1564_v29, %v653_v11  ;;  %v1053_v9 = vstv %s2251_s8 }
 0x270   : >> { %s1094_s17 = sadd.s32 14, %s2129_s21  ;;  %s1080_s25 = sadd.s32 %s2139_s20, %s1079_s22  ;;  %v666_v40 = vmul.f32 %v1566_v34, %v2234_v8  ;;  %v695_v41 = vmul.f32 %v1566_v34, %v2236_v10  ;;  %v724_v42 = vmul.f32 %v1566_v34, %v654_v12 }
 0x271   : >> { %s1095_s0 = sshra.s32 %s1094_s17, 7  ;;  %s1081_s19 = sadd.s32 %s1421_s13, %s1080_s25  ;;  %v667_v44 = vmul.f32 %v665_v36, %v663_v17  ;;  %v696_v45 = vmul.f32 %v694_v37, %v663_v17  ;;  %v725_v46 = vmul.f32 %v723_v39, %v663_v17 }
 0x272   : >> { %s1097_s6 = sadd.s32 %s2116_s10, %s1095_s0  ;;  %s2773_s2 = sld [smem:[#allocation33_spill]]  ;;  %v668_v48 = vmul.f32 %v666_v40, %v664_v35  ;;  %v697_v49 = vmul.f32 %v695_v41, %v664_v35  ;;  %v726_v50 = vmul.f32 %v724_v42, %v664_v35 }
 0x273   : >> { %2769 = sst [smem:[#allocation38_spill]] %s2256_s12  ;;  %s1422_s3 = sshll.u32 %s1097_s6, 8  ;;  %v670_v52 = vmul.f32 %v669_v30, %v667_v44  ;;  %v699_v53 = vmul.f32 %v698_v38, %v696_v45  ;;  %v728_v54 = vmul.f32 %v727_v43, %v725_v46  ;;  %v1070_v13 = vstv %s2256_s12 }
 0x274   : >> { %v904_v31 = vstv %s2770_s26  ;;  %v917_v32 = vstv %s2771_s16  ;;  %s2276_s27 = sld [smem:[#allocation7 + %s1081_s19]]  ;;  %s1100_s13 = sand.u32 127, %s1094_s17  ;;  %v671_v56 = vmul.f32 %v669_v30, %v668_v48  ;;  %v700_v57 = vmul.f32 %v698_v38, %v697_v49 }
 0x275   : >> { %v934_v33 = vstv %s2772_s30  ;;  %s2774_s15 = sld [smem:[#allocation34_spill]]  ;;  %s1107_s22 = sadd.s32 17, %s2129_s21  ;;  %v729_v58 = vmul.f32 %v727_v43, %v726_v50  ;;  %v672_v60 = vmax.f32 %v670_v52, 0.0  ;;  %v701_v61 = vmax.f32 %v699_v53, 0.0 }
 0x276   : >> { %s1101_s28 = sadd.s32 %s2139_s20, %s1100_s13  ;;  %s2775_s25 = sld [smem:[#allocation35_spill]]  ;;  %v730_v62 = vmax.f32 %v728_v54, 0.0  ;;  %v673_v0 = vmax.f32 %v671_v56, 0.0  ;;  %v702_v1 = vmax.f32 %v700_v57, 0.0 }
 0x277   : >> { %s1108_s0 = sshra.s32 %s1107_s22, 7  ;;  %s1102_s19 = sadd.s32 %s1422_s3, %s1101_s28  ;;  %v731_v4 = vmax.f32 %v729_v58, 0.0  ;;  %v674_v6 = vmin.f32 %v672_v60, 0.999  ;;  %v703_v7 = vmin.f32 %v701_v61, 0.999 }
 0x278   : >> { %v947_v47 = vstv %s2773_s2  ;;  %s2776_s6 = sld [smem:[#allocation36_spill]]  ;;  %s2777_s17 = sld [smem:[#allocation37_spill]]  ;;  %v732_v8 = vmin.f32 %v730_v62, 0.999  ;;  %v675_v10 = vmin.f32 %v673_v0, 0.999 }
 0x279   : >> { %s2286_s23 = sld [smem:[#allocation7 + %s1102_s19]]  ;;  %s1110_s29 = sadd.s32 %s2116_s10, %s1108_s0  ;;  %v704_v11 = vmin.f32 %v702_v1, 0.999  ;;  %v733_v12 = vmin.f32 %v731_v4, 0.999  ;;  %v676_v14 = vfloor.f32 %v674_v6  ;;  %v705_v15 = vfloor.f32 %v703_v7 }
 0x27a   : >> { %s2290_s13 = sand.u32 127, %s1107_s22  ;;  %s1423_s28 = sshll.u32 %s1110_s29, 8  ;;  %v734_v16 = vfloor.f32 %v732_v8  ;;  %v1083_v17 = vstv %s2276_s27  ;;  %v677_v29 = vfloor.f32 %v675_v10 }
 0x27b   : >> { %v968_v51 = vstv %s2774_s15  ;;  %s1124_s15 = sadd.s32 20, %s2129_s21  ;;  %s1114_s22 = sadd.s32 %s2139_s20, %s2290_s13  ;;  %v706_v30 = vfloor.f32 %v704_v11  ;;  %v735_v34 = vfloor.f32 %v733_v12  ;;  %v678_v36 = vsub.f32 %v674_v6, %v676_v14 }
 0x27c   : >> { %v998_v59 = vstv %s2775_s25  ;;  %s1125_s3 = sshra.s32 %s1124_s15, 7  ;;  %s1115_s29 = sadd.s32 %s1423_s28, %s1114_s22  ;;  %vm680_vm10 = vcmp.eq.f32.partialorder %v676_v14, 0.0  ;;  %vm686_vm11 = vcmp.eq.f32.partialorder %v676_v14, 1.0  ;;  %v707_v37 = vsub.f32 %v703_v7, %v705_v15 }
 0x27d   : >> { %s1127_s0 = sadd.s32 %s2116_s10, %s1125_s3  ;;  %s1130_s3 = sand.u32 127, %s1124_s15  ;;  %v679_v38 = vsub.f32 %v675_v10, %v677_v29  ;;  %vm681_vm12 = vcmp.eq.f32.partialorder %v677_v29, 0.0  ;;  %vm687_vm13 = vcmp.eq.f32.partialorder %v677_v29, 1.0  ;;  %v708_v39 = vsub.f32 %v704_v11, %v706_v30 }
 0x27e   : >> { %v1011_v63 = vstv %s2776_s6  ;;  %v1040_v5 = vstv %s2777_s17  ;;  %s1424_s19 = sshll.u32 %s1127_s0, 8  ;;  %s1131_s13 = sadd.s32 %s2139_s20, %s1130_s3  ;;  %v682_v40 = vsub.f32 1.0, %v678_v36  ;;  %v690_v41 = vsel %vm680_vm10, %v678_v36, 0.0 }
 0x27f   : >> { %v1104_v35 = vstv %s2286_s23  ;;  %s1132_s12 = sadd.s32 %s1424_s19, %s1131_s13  ;;  %vm709_vm14 = vcmp.eq.f32.partialorder %v705_v15, 0.0  ;;  %vm710_vm15 = vcmp.eq.f32.partialorder %v706_v30, 0.0  ;;  %s2308_s0 = sld [smem:[#allocation7 + %s1115_s29]]  ;;  %v683_v42 = vsub.f32 1.0, %v679_v38 }
 0x280   : >> { %s2310_s28 = sld [smem:[#allocation7 + %s1132_s12]]  ;;  %v691_v43 = vsel %vm681_vm12, %v679_v38, 0.0  ;;  %v711_v44 = vsub.f32 1.0, %v707_v37  ;;  %v712_v45 = vsub.f32 1.0, %v708_v39  ;;  %v2314_v46 = vsel %vm680_vm10, %v682_v40, 0.0  ;;  %s1137_s18 = sadd.s32 23, %s2129_s21 }
 0x281   : >> { %v688_v48 = vsel %vm686_vm11, %v682_v40, 0.0  ;;  %vm715_vm0 = vcmp.eq.f32.partialorder %v705_v15, 1.0  ;;  %vm716_vm1 = vcmp.eq.f32.partialorder %v706_v30, 1.0  ;;  %v2318_v49 = vsel %vm681_vm12, %v683_v42, 0.0  ;;  %s2408_s21 = sshra.s32 %s1137_s18, 7  ;;  %s2779_s14 = sld [smem:[#allocation27_spill]] }
 0x282   : >> { %v689_v50 = vsel %vm687_vm13, %v683_v42, 0.0  ;;  %v2321_v52 = vadd.f32 %v690_v41, %v688_v48  ;;  %v2324_v53 = vsel %vm709_vm14, %v711_v44, 0.0  ;;  %v2329_v56 = vsel %vm710_vm15, %v712_v45, 0.0  ;;  %s1140_s9 = sadd.s32 %s2116_s10, %s2408_s21  ;;  %s2428_s5 = sand.u32 127, %s1137_s18 }
 0x283   : >> { %v2326_v54 = vadd.f32 %v691_v43, %v689_v50  ;;  %v717_v57 = vsel %vm715_vm0, %v711_v44, 0.0  ;;  %v718_v58 = vsel %vm716_vm1, %v712_v45, 0.0  ;;  %v719_v60 = vsel %vm709_vm14, %v707_v37, 0.0  ;;  %s1425_s10 = sshll.u32 %s1140_s9, 8  ;;  %s1144_s11 = sadd.s32 %s2139_s20, %s2428_s5 }
 0x284   : >> { %v720_v61 = vsel %vm710_vm15, %v708_v39, 0.0  ;;  %v736_v62 = vsub.f32 %v732_v8, %v734_v16  ;;  %v737_v0 = vsub.f32 %v733_v12, %v735_v34  ;;  %v2333_v1 = vadd.f32 %v719_v60, %v717_v57  ;;  %s1145_s20 = sadd.s32 %s1425_s10, %s1144_s11 }
 0x285   : >> { %v2335_v4 = vadd.f32 %v720_v61, %v718_v58  ;;  %vm738_vm2 = vcmp.eq.f32.partialorder %v734_v16, 0.0  ;;  %vm739_vm3 = vcmp.eq.f32.partialorder %v735_v34, 0.0  ;;  %vm744_vm4 = vcmp.eq.f32.partialorder %v734_v16, 1.0  ;;  %s2492_s4 = sld [smem:[#allocation7 + %s1145_s20]] }
 0x286   : >> { %v740_v6 = vsub.f32 1.0, %v736_v62  ;;  %v741_v7 = vsub.f32 1.0, %v737_v0  ;;  %vm745_vm5 = vcmp.eq.f32.partialorder %v735_v34, 1.0  ;;  %v748_v10 = vsel %vm738_vm2, %v736_v62, 0.0 }
 0x287   : >> { %v749_v8 = vsel %vm739_vm3, %v737_v0, 0.0  ;;  %v1117_v11 = vstv %s2308_s0  ;;  %v1134_v12 = vstv %s2310_s28 }
 0x288   : >> { %v2339_v14 = vsel %vm738_vm2, %v740_v6, 0.0  ;;  %v2341_v15 = vsel %vm739_vm3, %v741_v7, 0.0  ;;  %v746_v29 = vsel %vm744_vm4, %v740_v6, 0.0  ;;  %v747_v16 = vsel %vm745_vm5, %v741_v7, 0.0 }
 0x289   : >> { %v2343_v30 = vadd.f32 %v748_v10, %v746_v29  ;;  %v2345_v34 = vadd.f32 %v749_v8, %v747_v16  ;;  %v769_v36 = vmul.f32 %v768_v21, %v2339_v14  ;;  %v770_v37 = vmul.f32 %v768_v21, %v2341_v15 }
 0x28a   : >> { %v799_v38 = vmul.f32 %v798_v23, %v2339_v14  ;;  %v800_v39 = vmul.f32 %v798_v23, %v2341_v15  ;;  %v833_v40 = vmul.f32 %v832_v25, %v2339_v14  ;;  %v834_v41 = vmul.f32 %v832_v25, %v2341_v15 }
 0x28b   : >> { %v782_v42 = vmul.f32 %v781_v22, %v2343_v30  ;;  %v783_v21 = vmul.f32 %v781_v22, %v2345_v34  ;;  %v812_v43 = vmul.f32 %v811_v24, %v2343_v30  ;;  %v813_v23 = vmul.f32 %v811_v24, %v2345_v34 }
 0x28c   : >> { %v846_v44 = vmul.f32 %v845_v26, %v2343_v30  ;;  %v847_v25 = vmul.f32 %v845_v26, %v2345_v34  ;;  %v863_v45 = vmul.f32 %v862_v27, %v2339_v14  ;;  %v864_v48 = vmul.f32 %v862_v27, %v2341_v15 }
 0x28d   : >> { %v784_v50 = vadd.f32 %v782_v42, %v769_v36  ;;  %v785_v22 = vadd.f32 %v783_v21, %v770_v37  ;;  %v814_v57 = vadd.f32 %v812_v43, %v799_v38  ;;  %v815_v58 = vadd.f32 %v813_v23, %v800_v39 }
 0x28e   : >> { %v848_v60 = vadd.f32 %v846_v44, %v833_v40  ;;  %v849_v24 = vadd.f32 %v847_v25, %v834_v41  ;;  %v876_v61 = vmul.f32 %v875_v28, %v2343_v30  ;;  %v877_v26 = vmul.f32 %v875_v28, %v2345_v34 }
 0x28f   : >> { %v786_v62 = vmul.f32 %v784_v50, %v2324_v53  ;;  %v787_v27 = vmul.f32 %v785_v22, %v2329_v56  ;;  %v816_v0 = vmul.f32 %v814_v57, %v2333_v1  ;;  %v817_v6 = vmul.f32 %v815_v58, %v2335_v4 }
 0x290   : >> { %v850_v7 = vmul.f32 %v848_v60, %v2324_v53  ;;  %v851_v10 = vmul.f32 %v849_v24, %v2329_v56  ;;  %v878_v8 = vadd.f32 %v876_v61, %v863_v45  ;;  %v879_v29 = vadd.f32 %v877_v26, %v864_v48  ;;  %v888_v24 = vld [vmem:[%s2779_s14] sm:$0xff]  ;;  %v889_v61 = vld [vmem:[%s2779_s14 + $0x8] sm:$0xff] }
 0x291   : >> { %v818_v28 = vadd.f32 %v816_v0, %v786_v62  ;;  %v819_v16 = vadd.f32 %v817_v6, %v787_v27  ;;  %v905_v36 = vmul.f32 %v904_v31, %v2339_v14  ;;  %v906_v37 = vmul.f32 %v904_v31, %v2341_v15 }
 0x292   : >> { %v880_v38 = vmul.f32 %v878_v8, %v2333_v1  ;;  %v881_v39 = vmul.f32 %v879_v29, %v2335_v4  ;;  %v918_v40 = vmul.f32 %v917_v32, %v2343_v30  ;;  %v919_v41 = vmul.f32 %v917_v32, %v2345_v34 }
 0x293   : >> { %v820_v42 = vmul.f32 %v818_v28, %v2314_v46  ;;  %v821_v31 = vmul.f32 %v819_v16, %v2318_v49  ;;  %v935_v21 = vmul.f32 %v934_v33, %v2339_v14  ;;  %v936_v43 = vmul.f32 %v934_v33, %v2341_v15 }
 0x294   : >> { %v882_v23 = vadd.f32 %v880_v38, %v850_v7  ;;  %v883_v44 = vadd.f32 %v881_v39, %v851_v10  ;;  %v920_v25 = vadd.f32 %v918_v40, %v905_v36  ;;  %v921_v45 = vadd.f32 %v919_v41, %v906_v37 }
 0x295   : >> { %v948_v32 = vmul.f32 %v947_v47, %v2343_v30  ;;  %v949_v48 = vmul.f32 %v947_v47, %v2345_v34  ;;  %v969_v33 = vmul.f32 %v968_v51, %v2339_v14  ;;  %v970_v50 = vmul.f32 %v968_v51, %v2341_v15 }
 0x296   : >> { %v884_v22 = vmul.f32 %v882_v23, %v2321_v52  ;;  %v885_v57 = vmul.f32 %v883_v44, %v2326_v54  ;;  %v922_v58 = vmul.f32 %v920_v25, %v2324_v53  ;;  %v923_v60 = vmul.f32 %v921_v45, %v2329_v56 }
 0x297   : >> { %v950_v26 = vadd.f32 %v948_v32, %v935_v21  ;;  %v951_v47 = vadd.f32 %v949_v48, %v936_v43  ;;  %v982_v62 = vmul.f32 %v981_v55, %v2343_v30  ;;  %v983_v51 = vmul.f32 %v981_v55, %v2345_v34 }
 0x298   : >> { %v886_v27 = vadd.f32 %v884_v22, %v820_v42  ;;  %v887_v0 = vadd.f32 %v885_v57, %v821_v31  ;;  %v999_v6 = vmul.f32 %v998_v59, %v2339_v14  ;;  %v1000_v7 = vmul.f32 %v998_v59, %v2341_v15 }
 0x299   : >> { %v952_v10 = vmul.f32 %v950_v26, %v2333_v1  ;;  %v953_v8 = vmul.f32 %v951_v47, %v2335_v4  ;;  %v984_v29 = vadd.f32 %v982_v62, %v969_v33  ;;  %v985_v55 = vadd.f32 %v983_v51, %v970_v50 }
 0x29a   : >> { %v890_v28 = vsel %vm2019_vm8, %v886_v27, %v888_v24  ;;  %v891_v16 = vsel %vm2023_vm9, %v887_v0, %v889_v61  ;;  %v1012_v36 = vmul.f32 %v1011_v63, %v2343_v30  ;;  %v1013_v59 = vmul.f32 %v1011_v63, %v2345_v34  ;;  %v1414_v27 = vld [vmem:[%s2779_s14 + $0x10] sm:$0xff] }
 0x29b   : >> { %892 = vst [vmem:[%s2779_s14] sm:$0xff] %v890_v28  ;;  %893 = vst [vmem:[%s2779_s14 + $0x8] sm:$0xff] %v891_v16  ;;  %v954_v37 = vadd.f32 %v952_v10, %v922_v58  ;;  %v955_v38 = vadd.f32 %v953_v8, %v923_v60  ;;  %v986_v39 = vmul.f32 %v984_v29, %v2324_v53 }
 0x29c   : >> { %v987_v40 = vmul.f32 %v985_v55, %v2329_v56  ;;  %v1014_v41 = vadd.f32 %v1012_v36, %v999_v6  ;;  %v1015_v42 = vadd.f32 %v1013_v59, %v1000_v7  ;;  %v1041_v31 = vmul.f32 %v1040_v5, %v2339_v14 }
 0x29d   : >> { %v1042_v63 = vmul.f32 %v1040_v5, %v2341_v15  ;;  %v956_v21 = vmul.f32 %v954_v37, %v2314_v46  ;;  %v957_v43 = vmul.f32 %v955_v38, %v2318_v49  ;;  %v1054_v23 = vmul.f32 %v1053_v9, %v2343_v30 }
 0x29e   : >> { %v1055_v44 = vmul.f32 %v1053_v9, %v2345_v34  ;;  %v1016_v25 = vmul.f32 %v1014_v41, %v2333_v1  ;;  %v1017_v45 = vmul.f32 %v1015_v42, %v2335_v4  ;;  %v1071_v5 = vmul.f32 %v1070_v13, %v2339_v14 }
 0x29f   : >> { %v1072_v32 = vmul.f32 %v1070_v13, %v2341_v15  ;;  %v1056_v48 = vadd.f32 %v1054_v23, %v1041_v31  ;;  %v1084_v9 = vmul.f32 %v1083_v17, %v2343_v30  ;;  %v1085_v50 = vmul.f32 %v1083_v17, %v2345_v34 }
 0x2a0   : >> { %v1057_v33 = vadd.f32 %v1055_v44, %v1042_v63  ;;  %v1018_v22 = vadd.f32 %v1016_v25, %v986_v39  ;;  %v1019_v57 = vadd.f32 %v1017_v45, %v987_v40  ;;  %v1105_v58 = vmul.f32 %v1104_v35, %v2339_v14 }
 0x2a1   : >> { %v1106_v13 = vmul.f32 %v1104_v35, %v2341_v15  ;;  %v1058_v60 = vmul.f32 %v1056_v48, %v2324_v53  ;;  %v1086_v61 = vadd.f32 %v1084_v9, %v1071_v5  ;;  %v1087_v26 = vadd.f32 %v1085_v50, %v1072_v32  ;;  %v1415_v35 = vld [vmem:[%s2779_s14 + $0x18] sm:$0xff] }
 0x2a2   : >> { %v1059_v24 = vmul.f32 %v1057_v33, %v2329_v56  ;;  %v1020_v47 = vmul.f32 %v1018_v22, %v2321_v52  ;;  %v1021_v17 = vmul.f32 %v1019_v57, %v2326_v54  ;;  %v1118_v62 = vmul.f32 %v1117_v11, %v2343_v30 }
 0x2a3   : >> { %v1119_v51 = vmul.f32 %v1117_v11, %v2345_v34  ;;  %v1088_v0 = vmul.f32 %v1086_v61, %v2333_v1  ;;  %v1089_v6 = vmul.f32 %v1087_v26, %v2335_v4  ;;  %v1135_v7 = vmul.f32 %v1134_v12, %v2339_v14 }
 0x2a4   : >> { %v1022_v10 = vadd.f32 %v1020_v47, %v956_v21  ;;  %v1023_v8 = vadd.f32 %v1021_v17, %v957_v43  ;;  %v1120_v29 = vadd.f32 %v1118_v62, %v1105_v58  ;;  %v1136_v11 = vmul.f32 %v1134_v12, %v2341_v15  ;;  %v1426_v43 = vld [vmem:[%s2779_s14 + $0x20] sm:$0xff] }
 0x2a5   : >> { %v1121_v55 = vadd.f32 %v1119_v51, %v1106_v13  ;;  %v1090_v28 = vadd.f32 %v1088_v0, %v1058_v60  ;;  %v1091_v16 = vadd.f32 %v1089_v6, %v1059_v24  ;;  %v1147_v36 = vstv %s2492_s4 }
 0x2a6   : >> { %v1026_v59 = vsel %vm2019_vm8, %v1022_v10, %v1414_v27  ;;  %v1027_v37 = vsel %vm2023_vm9, %v1023_v8, %v1415_v35  ;;  %v1122_v38 = vmul.f32 %v1120_v29, %v2324_v53  ;;  %v1148_v12 = vmul.f32 %v1147_v36, %v2343_v30 }
 0x2a7   : >> { %v1123_v14 = vmul.f32 %v1121_v55, %v2329_v56  ;;  %1416 = vst [vmem:[%s2779_s14 + $0x10] sm:$0xff] %v1026_v59  ;;  %1417 = vst [vmem:[%s2779_s14 + $0x18] sm:$0xff] %v1027_v37  ;;  %v1092_v39 = vmul.f32 %v1090_v28, %v2314_v46  ;;  %v1093_v40 = vmul.f32 %v1091_v16, %v2318_v49  ;;  %v1427_v49 = vld [vmem:[%s2779_s14 + $0x28] sm:$0xff] }
 0x2a8   : >> { %v1149_v15 = vmul.f32 %v1147_v36, %v2345_v34  ;;  %v1150_v41 = vadd.f32 %v1148_v12, %v1135_v7 }
 0x2aa   : >> { %v1151_v42 = vadd.f32 %v1149_v15, %v1136_v11  ;;  %v1152_v53 = vmul.f32 %v1150_v41, %v2333_v1 }
 0x2ac   : >> { %v1153_v31 = vmul.f32 %v1151_v42, %v2335_v4  ;;  %v1154_v56 = vadd.f32 %v1152_v53, %v1122_v38 }
 0x2ae   : >> { %v1155_v63 = vadd.f32 %v1153_v31, %v1123_v14  ;;  %v1156_v21 = vmul.f32 %v1154_v56, %v2321_v52 }
 0x2b0   : >> { %v1157_v46 = vmul.f32 %v1155_v63, %v2326_v54  ;;  %v1158_v23 = vadd.f32 %v1156_v21, %v1092_v39 }
 0x2b2   : >> { %v1159_v30 = vadd.f32 %v1157_v46, %v1093_v40  ;;  %v1162_v34 = vsel %vm2019_vm8, %v1158_v23, %v1426_v43 }
 0x2b3   : >> { %1428 = vst [vmem:[%s2779_s14 + $0x20] sm:$0xff] %v1162_v34 }
 0x2b4   : >> { %v1163_v44 = vsel %vm2023_vm9, %v1159_v30, %v1427_v49 }
 0x2b5   : >> { %1429 = vst [vmem:[%s2779_s14 + $0x28] sm:$0xff] %v1163_v44 }
 0x2b6 PF: >> { %s2781_s1 = sld [smem:[#allocation29_spill]]  ;;  %s2782_s12 = sld [smem:[#allocation25_spill]] }
 0x2bc   : >> { %s461_s30 = sadd.s32 1, %s2781_s1  }
 0x2bd   : >> { %p460_p4 = scmp.ge.s32.totalorder %s461_s30, %s2782_s12 }
 0x2bf   : > { %463 = sbr.rel (!%p460_p4) target bundleno = 260 (0x104), region = 107 }
 0x2c6 PF: > { %s2783_s8 = sld [smem:[#allocation19_spill]]  ;;  %s2784_s26 = sld [smem:[#allocation18_spill]] }
 0x2c7   : > { %s2785_s16 = sld [smem:[#allocation28_spill]]  ;;  %s2787_s17 = sld [smem:[#allocation40_spill]] }
 0x2c8   : > { %s1768_s29 = smov [#allocation10]  }
 0x2c9   : > { %s1619_s3 = sshll.u32 %s1768_s29, 4  ;;  %s1620_s3 = int_to_ptr.vmem [resolvable:$false] %s1619_s3 }
 0x2ca   : > { %s1621_s13 = scalar_lea.vmem %s1620_s3, 512 }
 0x2cc   : > { %s1171_s27 = sand.u32 1, %s2783_s8   ;;  %s1439_s15 = sshll.u32 %s2784_s26, 8 }
 0x2cd   : > { %s1212_s25 = sshll.u32 %s2785_s16, 4  ;;  %s2571_s22 = scalar_lea.hbm %s2787_s17, %s1439_s15  ;;  %s2573_s25 = int_to_ptr.vmem [resolvable:$true] %s1212_s25 }
 0x2ce   : > { %s2575_s30 = scalar_lea.sflag [#allocation11], %s1171_s27  ;;  %s1615_s19 = scalar_lea.vmem %s2573_s25, 256 }
 0x2cf   : > { %p1616_p5 = scmp.ne.s32.totalorder %s2573_s25, %s1615_s19  ;;  %p1622_p8 = scmp.lt.s32.totalorder %s2573_s25, %s1620_s3 }
 0x2d0   : > { %p1623_p9 = scmp.lt.s32.totalorder %s1621_s13, %s1615_s19 }
 0x2d1   : > { %p1617_p6 = pnand %p1616_p5, %p1859_p13 }
 0x2d2   : > { %p1624_p10 = por %p1623_p9, %p1622_p8 }
 0x2d3   : > { %p1618_p7 = pneg %p1617_p6 }
 0x2d5   : > { %p1625_p11 = pnand %p1624_p10, %p1618_p7 }
 0x2d7   : > { %1628 = shalt.err (!%p1625_p11)
}
 0x2d8   : > { %s1629_s0 = scalar_lea.hbm %s2571_s22, 256  ;;  %s1633_s21 = scalar_lea.hbm %s2787_s17, 512 }
 0x2d9   : > { %p1630_p0 = scmp.ne.s32.totalorder %s2571_s22, %s1629_s0  ;;  %p1634_p3 = scmp.lt.u32.totalorder %s2571_s22, %s2787_s17 }
 0x2da   : > { %p1635_p4 = scmp.lt.u32.totalorder %s1633_s21, %s1629_s0  ;;  %p1637_p6 = scmp.lt.u32.totalorder %s1629_s0, %s2571_s22 }
 0x2db   : > { %p1631_p1 = pnand %p1630_p0, %p1859_p13 }
 0x2dc   : > { %p1636_p5 = por %p1635_p4, %p1634_p3 }
 0x2dd   : > { %p1632_p2 = pneg %p1631_p1 }
 0x2de   : > { %p1638_p7 = por %p1637_p6, %p1636_p5 }
 0x2e0   : > { %p1639_p8 = pnand %p1638_p7, %p1632_p2 }
 0x2e2   : > { %1642 = shalt.err (!%p1639_p8)
}
 0x2e3   : > { %s1769_s9 = smov 128   ;;  %s2788_s5 = sld [smem:[#allocation27_spill]] }
 0x2e4   : > { %s2789_s10 = sld [smem:[#allocation26_spill]]  ;;  %s2790_s11 = sld [smem:[#allocation24_spill]] }
 0x2e5   : > { %s1770_s20 = smov 8   ;;  %s2791_s1 = sld [smem:[#allocation41_spill]] }
 0x2e6   : > { %1462 = dma.vmem_to_hbm [thread:$0]  (%p1859_p13), %s2573_s25, 256, %s2571_s22, %s2575_s30, %s1769_s9, %s1769_s9, %s1770_s20  }
 0x2e7   : > { %s1460_s8 = smul.u32 768, %s2784_s26  ;;  %s2792_s19 = sld [smem:[#allocation39_spill]] }
 0x2e8   : > { %s1771_s26 = smov [#allocation8]  }
 0x2e9   : > { %s1193_s16 = sshll.u32 %s2788_s5, 4  ;;  %s2611_s16 = int_to_ptr.vmem [resolvable:$true] %s1193_s16 }
 0x2ea   : > { %s1231_s27 = sshll.u32 %s2789_s10, 4  ;;  %s1167_s25 = scalar_lea.sflag [#allocation9], %s2790_s11  ;;  %s2619_s27 = int_to_ptr.vmem [resolvable:$true] %s1231_s27 }
 0x2eb   : > { %s2607_s12 = scalar_lea.hbm %s2791_s1, %s1439_s15  ;;  %s1643_s22 = scalar_lea.vmem %s2611_s16, 768 }
 0x2ec   : > { %p1644_p9 = scmp.ne.s32.totalorder %s2611_s16, %s1643_s22  ;;  %s1647_s15 = sshll.u32 %s1771_s26, 4  ;;  %s1648_s15 = int_to_ptr.vmem [resolvable:$false] %s1647_s15 }
 0x2ed   : > { %s2617_s29 = scalar_lea.hbm %s2792_s19, %s1460_s8  ;;  %s1649_s3 = scalar_lea.vmem %s1648_s15, 1536 }
 0x2ee   : > { %p1645_p10 = pnand %p1644_p9, %p1859_p13  ;;  %p1650_p0 = scmp.lt.s32.totalorder %s2611_s16, %s1648_s15 }
 0x2ef   : > { %p1651_p1 = scmp.lt.s32.totalorder %s1649_s3, %s1643_s22 }
 0x2f0   : > { %p1646_p11 = pneg %p1645_p10 }
 0x2f1   : > { %p1652_p2 = por %p1651_p1, %p1650_p0 }
 0x2f3   : > { %p1653_p3 = pnand %p1652_p2, %p1646_p11 }
 0x2f5   : > { %1656 = shalt.err (!%p1653_p3)
}
 0x2f6   : > { %s1657_s13 = scalar_lea.hbm %s2617_s29, 768  ;;  %s1661_s18 = scalar_lea.hbm %s2792_s19, 1536 }
 0x2f7   : > { %p1658_p4 = scmp.ne.s32.totalorder %s2617_s29, %s1657_s13  ;;  %p1662_p7 = scmp.lt.u32.totalorder %s2617_s29, %s2792_s19 }
 0x2f8   : > { %p1663_p8 = scmp.lt.u32.totalorder %s1661_s18, %s1657_s13  ;;  %p1665_p10 = scmp.lt.u32.totalorder %s1657_s13, %s2617_s29 }
 0x2f9   : > { %p1659_p5 = pnand %p1658_p4, %p1859_p13 }
 0x2fa   : > { %p1664_p9 = por %p1663_p8, %p1662_p7 }
 0x2fb   : > { %p1660_p6 = pneg %p1659_p5 }
 0x2fc   : > { %p1666_p11 = por %p1665_p10, %p1664_p9 }
 0x2fe   : > { %p1667_p0 = pnand %p1666_p11, %p1660_p6 }
 0x300   : > { %1670 = shalt.err (!%p1667_p0)
}
 0x301   : > { %1461 = dma.vmem_to_hbm [thread:$0]  (%p1859_p13), %s2611_s16, 768, %s2617_s29, %s1167_s25, %s1769_s9, %s1769_s9, %s1770_s20  }
 0x302   : > { %s1671_s14 = scalar_lea.vmem %s2619_s27, 256  ;;  %s1772_s5 = smov [#allocation12]  }
 0x303   : > { %p1672_p1 = scmp.ne.s32.totalorder %s2619_s27, %s1671_s14  ;;  %s1675_s10 = sshll.u32 %s1772_s5, 4  ;;  %s1676_s10 = int_to_ptr.vmem [resolvable:$false] %s1675_s10 }
 0x304   : > { %s1677_s24 = scalar_lea.vmem %s1676_s10, 512  ;;  %p1678_p4 = scmp.lt.s32.totalorder %s2619_s27, %s1676_s10 }
 0x305   : > { %p1673_p2 = pnand %p1672_p1, %p1859_p13  ;;  %p1679_p5 = scmp.lt.s32.totalorder %s1677_s24, %s1671_s14 }
 0x307   : > { %p1674_p3 = pneg %p1673_p2  ;;  %p1680_p6 = por %p1679_p5, %p1678_p4 }
 0x309   : > { %p1681_p7 = pnand %p1680_p6, %p1674_p3 }
 0x30b   : > { %1684 = shalt.err (!%p1681_p7)
}
 0x30c   : > { %s1685_s11 = scalar_lea.hbm %s2607_s12, 256  ;;  %s1689_s16 = scalar_lea.hbm %s2791_s1, 512 }
 0x30d   : > { %p1686_p8 = scmp.ne.s32.totalorder %s2607_s12, %s1685_s11  ;;  %p1690_p11 = scmp.lt.u32.totalorder %s2607_s12, %s2791_s1 }
 0x30e   : > { %p1691_p0 = scmp.lt.u32.totalorder %s1689_s16, %s1685_s11  ;;  %p1693_p2 = scmp.lt.u32.totalorder %s1685_s11, %s2607_s12 }
 0x30f   : > { %p1687_p9 = pnand %p1686_p8, %p1859_p13 }
 0x310   : > { %p1692_p1 = por %p1691_p0, %p1690_p11 }
 0x311   : > { %p1688_p10 = pneg %p1687_p9 }
 0x312   : > { %p1694_p3 = por %p1693_p2, %p1692_p1 }
 0x314   : > { %p1695_p4 = pnand %p1694_p3, %p1688_p10 }
 0x316   : > { %1698 = shalt.err (!%p1695_p4)
}
 0x317   : > { %1463 = dma.vmem_to_hbm [thread:$0]  (%p1859_p13), %s2619_s27, 256, %s2607_s12, %s2575_s30, %s1769_s9, %s1769_s9, %s1770_s20  }
 0x318 PF: > { %s2793_s29 = sld [smem:[#allocation19_spill]]  ;;  %s2794_s25 = sld [smem:[#allocation16_spill]] }
 0x31e   : > { %p1477_p5 = scmp.ge.s32.totalorder %s2793_s29, 1  ;;  %s1246_s26 = sand.u32 1, %s2794_s25  }
 0x31f   : > { %s1247_s15 = scalar_lea.sflag [#allocation9], %s1246_s26 }
 0x320   : > { %p1468_p6 = pnand %p1477_p5, %p1852_p12 }
 0x322   : > { %1726 = dma.done.wait (!%p1468_p6), %s1247_s15, 768  }
 0x323   : > { %1728 = vsyncadd (!%p1468_p6), %s1247_s15, 4294966528  ;;  %s2796_s2 = sadd.s32 4294967295, %s2793_s29  }
 0x324   : > { %s1255_s3 = sand.u32 1, %s2796_s2  }
 0x325   : > { %s1256_s13 = scalar_lea.sflag [#allocation11], %s1255_s3 }
 0x326   : > { %1730 = dma.done.wait (!%p1468_p6), %s1256_s13, 512  }
 0x327   : > { %1732 = vsyncadd (!%p1468_p6), %s1256_s13, 4294966784  ;;  %s41_s16 = sadd.s32 1, %s2793_s29   ;;  %s2797_s3 = sld [smem:[#allocation17_spill]] }
 0x328   : > { %p38_p13 = scmp.ge.s32.totalorder %s41_s16, 3   ;;  %s2798_s14 = sld [smem:[#allocation22_spill]] }
 0x329   : > { %s2799_s15 = sld [smem:[#allocation20_spill]] }
 0x32a   :  { %40 = sbr.rel (!%p38_p13) target bundleno = 53 (0x35), region = 118 }
 0x331   :  { %1270 = vsyncpa [#allocation9], 1 }
 0x332   :  { %1272 = vsyncpa [#allocation9 + $0x1], 1 }
 0x333   :  { %1273 = vsyncpa [#allocation11], 1 }
 0x334   :  { %1275 = vsyncpa [#allocation11 + $0x1], 1 }

</bundles_post_ra>
